<compile_context>
chip_gen: v5e
topology: v5e:2x2
jax: 0.10.0
libtpu: 0.0.40
codegen_flags: <defaults>
</compile_context>

<pallas_src>
import math
import jax
import jax.numpy as jnp
from jax import lax
from jax.experimental import pallas as pl
from jax.experimental.pallas import tpu as pltpu

# ---- problem sizes (small, consistent with the module's forward) ----
B, N, T, C = 2, 4, 8, 32      # batch, particles, time, embed_dim
H = 4                         # n_head
HD = C // H                   # head dim = 8
HDIM = 64                     # mlp hidden (h_dim)
S = N * T                     # tokens per batch = 32
BS = B * S                    # total rows = 64
EPS = 1e-5                    # nn.LayerNorm default eps

# ---- fused parameter-slab layout (one DMA for all weights + head mask) ----
SLAB_LANES = 128
_LAYOUT = [
    ("wqkv",  (C, 3 * C)),     # fused Wq|Wk|Wv, 1/sqrt(HD) folded into Wq cols
    ("wp",    (C, C)),
    ("w1",    (C, HDIM)),
    ("w2",    (HDIM, HDIM)),
    ("w3",    (HDIM, C)),
    ("g1",    (1, C)),
    ("be1",   (1, C)),
    ("g2",    (1, C)),
    ("be2",   (1, C)),
    ("b1",    (1, HDIM)),
    ("b2",    (1, HDIM)),
    ("b3",    (1, C)),
    ("maskv", (H * S, C)),     # constant block-diagonal head mask (0/1)
]
_SHP = dict(_LAYOUT)
_OFF = {}
_row = 0
for _name, _shape in _LAYOUT:
    _OFF[_name] = _row
    _row += -(-_shape[0] // 8) * 8     # pad every block to a sublane multiple
SLAB_ROWS = _row                        # 408 rows (multiple of 8), 128 lanes


def eit_block_kernel(x_ref, w_ref, o_ref):
    def par(name):                      # static sub-view of the fused weight slab
        r, (nr, nc) = _OFF[name], _SHP[name]
        return w_ref[r:r + nr, 0:nc]

    x = x_ref[...]                                              # (BS, C) f32

    # ---- ln1 (two-pass, matches nn.LayerNorm numerics) ----
    mu = jnp.mean(x, axis=-1, keepdims=True)
    xc = x - mu
    var = jnp.mean(xc * xc, axis=-1, keepdims=True)
    xn = xc * lax.rsqrt(var + EPS) * par("g1") + par("be1")

    # ---- fused QKV projection (1/sqrt(HD) scale pre-folded into Wq) ----
    qkv = jnp.dot(xn, par("wqkv"), preferred_element_type=jnp.float32)   # (BS, 3C)
    q = qkv[:, 0:C]
    k = qkv[:, C:2 * C]
    v = qkv[:, 2 * C:3 * C]

    # ---- lane-dense per-(batch, head) attention ----
    maskv = par("maskv")                                        # (H*S, C) 0/1
    q3 = q.reshape(B, S, C)
    k3 = k.reshape(B, S, C)
    v3 = v.reshape(B, S, C)

    def tile_heads(t):   # (B,S,C) -> (B,H*S,C): sublane tiling only, no lane moves
        return jnp.broadcast_to(t[:, None, :, :], (B, H, S, C)).reshape(B, H * S, C)

    khat = tile_heads(k3) * maskv      # row h*S+t keeps only head-h channels of k[t]
    vhat = tile_heads(v3) * maskv

    # scores packed (B, S, H*S): lanes 100% filled; per-head contraction via mask
    s = jnp.einsum("bqc,bkc->bqk", q3, khat,
                   preferred_element_type=jnp.float32)          # (2, 32, 128)
    # one shared max per query row: softmax is shift-invariant per head segment
    # and no lane here is masked, so this is exact and overflow-safe.
    m = jnp.max(s, axis=-1, keepdims=True)
    p = jnp.exp(s - m)                                          # (2, 32, 128)

    # unnormalised value matmul; normalise AFTER on the tiny (BS, C) result
    y_un = jnp.einsum("bqk,bkc->bqc", p, vhat,
                      preferred_element_type=jnp.float32).reshape(BS, C)
    den = jnp.dot(p.reshape(BS, H * S), maskv,
                  preferred_element_type=jnp.float32)           # per-(row, head) sums
    y = y_un * pl.reciprocal(den, approx=False)                 # exact reciprocal

    x1 = x + jnp.dot(y, par("wp"), preferred_element_type=jnp.float32)   # residual 1

    # ---- ln2 + MLP (Linear->ReLU->Linear->ReLU->Linear; Dropout = identity) ----
    mu2 = jnp.mean(x1, axis=-1, keepdims=True)
    xc2 = x1 - mu2
    var2 = jnp.mean(xc2 * xc2, axis=-1, keepdims=True)
    x1n = xc2 * lax.rsqrt(var2 + EPS) * par("g2") + par("be2")

    h1 = jnp.maximum(
        jnp.dot(x1n, par("w1"), preferred_element_type=jnp.float32) + par("b1"), 0.0)
    h2 = jnp.maximum(
        jnp.dot(h1, par("w2"), preferred_element_type=jnp.float32) + par("b2"), 0.0)
    h3 = jnp.dot(h2, par("w3"), preferred_element_type=jnp.float32) + par("b3")

    o_ref[...] = x1 + h3                                        # residual 2


def make_params(key):
    ks = jax.random.split(key, 10)
    sc = 0.02
    return {
        # attention projections, stored (in, out), no bias (linear_bias=False)
        "wq": jax.random.normal(ks[0], (C, C), jnp.float32) * sc,
        "wk": jax.random.normal(ks[1], (C, C), jnp.float32) * sc,
        "wv": jax.random.normal(ks[2], (C, C), jnp.float32) * sc,
        "wp": jax.random.normal(ks[3], (C, C), jnp.float32) * sc,
        # layernorms (stored as (1, C) for TPU-friendly 2D layout)
        "g1": jnp.ones((1, C), jnp.float32),
        "be1": jnp.zeros((1, C), jnp.float32),
        "g2": jnp.ones((1, C), jnp.float32),
        "be2": jnp.zeros((1, C), jnp.float32),
        # MLP (biases enabled, PyTorch default)
        "w1": jax.random.normal(ks[4], (C, HDIM), jnp.float32) * sc,
        "b1": jax.random.normal(ks[5], (1, HDIM), jnp.float32) * sc,
        "w2": jax.random.normal(ks[6], (HDIM, HDIM), jnp.float32) * sc,
        "b2": jax.random.normal(ks[7], (1, HDIM), jnp.float32) * sc,
        "w3": jax.random.normal(ks[8], (HDIM, C), jnp.float32) * sc,
        "b3": jax.random.normal(ks[9], (1, C), jnp.float32) * sc,
    }


def pack_params(p):
    """One-time constant weight transforms (NOT per-call work):
      * fuse Wq|Wk|Wv into one (C, 3C) matrix, folding 1/sqrt(head_dim) into Wq
      * build the block-diagonal head mask used by the lane-dense attention
      * pack everything into a single lane-padded (SLAB_ROWS, 128) f32 slab
        so the kernel needs exactly one weight DMA."""
    scale = 1.0 / math.sqrt(HD)
    wqkv = jnp.concatenate([p["wq"] * scale, p["wk"], p["wv"]], axis=1)   # (C, 3C)
    row_head = jnp.arange(H * S, dtype=jnp.int32) // S                    # head of packed row
    col_head = jnp.arange(C, dtype=jnp.int32) // HD                       # head of channel
    maskv = (row_head[:, None] == col_head[None, :]).astype(jnp.float32)  # (H*S, C)

    entries = {"wqkv": wqkv, "wp": p["wp"], "w1": p["w1"], "w2": p["w2"],
               "w3": p["w3"], "g1": p["g1"], "be1": p["be1"], "g2": p["g2"],
               "be2": p["be2"], "b1": p["b1"], "b2": p["b2"], "b3": p["b3"],
               "maskv": maskv}
    slab = jnp.zeros((SLAB_ROWS, SLAB_LANES), jnp.float32)
    for name, shape in _LAYOUT:
        r = _OFF[name]
        slab = slab.at[r:r + shape[0], 0:shape[1]].set(entries[name])
    return slab


def eit_block_forward(x, slab):
    xf = x.reshape(BS, C)                      # collapse (B, N, T) -> rows
    out = pl.pallas_call(
        eit_block_kernel,
        out_shape=jax.ShapeDtypeStruct((BS, C), jnp.float32),
        grid_spec=pltpu.PrefetchScalarGridSpec(
            num_scalar_prefetch=0,
            grid=(1,),                          # whole problem fits one VMEM step
            in_specs=[pl.BlockSpec((BS, C), lambda i: (0, 0)),
                      pl.BlockSpec((SLAB_ROWS, SLAB_LANES), lambda i: (0, 0))],
            out_specs=pl.BlockSpec((BS, C), lambda i: (0, 0)),
        ),
        compiler_params=pltpu.CompilerParams(
            dimension_semantics=("arbitrary",)),
    )(xf, slab)
    return out.reshape(B, N, T, C)


def eit_block_reference(x, p):
    """Pure-JAX reference with the original (unfused, unscaled) parameters."""
    xf = x.reshape(B, S, C)

    def ln(z, g, b):
        mu = jnp.mean(z, -1, keepdims=True)
        var = jnp.mean((z - mu) ** 2, -1, keepdims=True)
        return (z - mu) * jax.lax.rsqrt(var + EPS) * g + b

    xn = ln(xf, p["g1"][0], p["be1"][0])
    q = xn @ p["wq"]
    k = xn @ p["wk"]
    v = xn @ p["wv"]
    qh = q.reshape(B, S, H, HD).transpose(0, 2, 1, 3)
    kh = k.reshape(B, S, H, HD).transpose(0, 2, 1, 3)
    vh = v.reshape(B, S, H, HD).transpose(0, 2, 1, 3)
    att = jnp.einsum("bhqd,bhkd->bhqk", qh, kh) / (HD ** 0.5)
    att = jax.nn.softmax(att, axis=-1)
    y = jnp.einsum("bhqk,bhkd->bhqd", att, vh).transpose(0, 2, 1, 3).reshape(B, S, C)
    x1 = xf + y @ p["wp"]
    x1n = ln(x1, p["g2"][0], p["be2"][0])
    h1 = jax.nn.relu(x1n @ p["w1"] + p["b1"][0])
    h2 = jax.nn.relu(h1 @ p["w2"] + p["b2"][0])
    h3 = h2 @ p["w3"] + p["b3"][0]
    return (x1 + h3).reshape(B, N, T, C)


if __name__ == "__main__":
    key = jax.random.PRNGKey(0)
    kx, kp = jax.random.split(key)
    x = jax.random.normal(kx, (B, N, T, C), jnp.float32)
    params = make_params(kp)
    slab = pack_params(params)                 # one-time weight fusion / mask build

    out = eit_block_forward(x, slab)
    out = jax.block_until_ready(out)

    ref = eit_block_reference(x, params)
    assert out.shape == (B, N, T, C)
    assert jnp.allclose(out, ref, rtol=1e-4, atol=1e-4), "kernel mismatch vs JAX reference"

    # note: attn_pdrop / resid_pdrop dropouts are identity (inference / eval mode)
    print("KERNEL_OK")
</pallas_src>

<mosaic_0001>
module attributes {stable_mosaic.version = 11 : i64} {
  func.func @eit_block_kernel(%arg0: i32, %arg1: memref<64x32xf32, #tpu.memory_space<vmem>>, %arg2: memref<408x128xf32, #tpu.memory_space<vmem>>, %arg3: memref<64x32xf32, #tpu.memory_space<vmem>>) attributes {dimension_semantics = [#tpu.dimension_semantics<arbitrary>], iteration_bounds = array<i64: 1>, scalar_prefetch = 0 : i64, scratch_operands = 0 : i64, tpu.core_type = #tpu.core_type<tc>, window_params = [{pipeline_mode = #tpu.pipeline_mode<synchronous>, transform_indices = @transform_0, window_bounds = array<i64: 64, 32>}, {pipeline_mode = #tpu.pipeline_mode<synchronous>, transform_indices = @transform_1, window_bounds = array<i64: 408, 128>}, {pipeline_mode = #tpu.pipeline_mode<synchronous>, transform_indices = @transform_2, window_bounds = array<i64: 64, 32>}]} {
    %c0 = arith.constant 0 : index
    %c0_0 = arith.constant 0 : index
    %0 = vector.load %arg1[%c0, %c0_0] : memref<64x32xf32, #tpu.memory_space<vmem>>, vector<64x32xf32>
    %cst = arith.constant dense<0.000000e+00> : vector<64xf32>
    %1 = vector.multi_reduction <add>, %0, %cst [1] : vector<64x32xf32> to vector<64xf32>
    %2 = vector.shape_cast %1 : vector<64xf32> to vector<64x1xf32>
    %cst_1 = arith.constant 3.200000e+01 : f32
    %3 = vector.broadcast %cst_1 : f32 to vector<64x1xf32>
    %4 = arith.divf %2, %3 : vector<64x1xf32>
    %5 = vector.broadcast %4 : vector<64x1xf32> to vector<64x32xf32>
    %6 = arith.subf %0, %5 : vector<64x32xf32>
    %7 = arith.mulf %6, %6 : vector<64x32xf32>
    %cst_2 = arith.constant dense<0.000000e+00> : vector<64xf32>
    %8 = vector.multi_reduction <add>, %7, %cst_2 [1] : vector<64x32xf32> to vector<64xf32>
    %9 = vector.shape_cast %8 : vector<64xf32> to vector<64x1xf32>
    %cst_3 = arith.constant 3.200000e+01 : f32
    %10 = vector.broadcast %cst_3 : f32 to vector<64x1xf32>
    %11 = arith.divf %9, %10 : vector<64x1xf32>
    %cst_4 = arith.constant 9.99999974E-6 : f32
    %12 = vector.broadcast %cst_4 : f32 to vector<64x1xf32>
    %13 = arith.addf %11, %12 : vector<64x1xf32>
    %14 = math.rsqrt %13 : vector<64x1xf32>
    %15 = vector.broadcast %14 : vector<64x1xf32> to vector<64x32xf32>
    %16 = arith.mulf %6, %15 : vector<64x32xf32>
    %c224 = arith.constant 224 : index
    %c0_5 = arith.constant 0 : index
    %17 = vector.load %arg2[%c224, %c0_5] : memref<408x128xf32, #tpu.memory_space<vmem>>, vector<1x32xf32>
    %18 = vector.broadcast %17 : vector<1x32xf32> to vector<64x32xf32>
    %19 = arith.mulf %16, %18 : vector<64x32xf32>
    %c232 = arith.constant 232 : index
    %c0_6 = arith.constant 0 : index
    %20 = vector.load %arg2[%c232, %c0_6] : memref<408x128xf32, #tpu.memory_space<vmem>>, vector<1x32xf32>
    %21 = vector.broadcast %20 : vector<1x32xf32> to vector<64x32xf32>
    %22 = arith.addf %19, %21 : vector<64x32xf32>
    %c0_7 = arith.constant 0 : index
    %c0_8 = arith.constant 0 : index
    %23 = vector.load %arg2[%c0_7, %c0_8] : memref<408x128xf32, #tpu.memory_space<vmem>>, vector<32x96xf32>
    %cst_9 = arith.constant dense<0.000000e+00> : vector<64x96xf32>
    %24 = tpu.matmul %22, %23, %cst_9 {dimension_numbers = #tpu.dot_dimension_numbers<[1], [0], [0], [1], [0, 0, 1, 1], [], []>} : vector<64x32xf32>, vector<32x96xf32>, vector<64x96xf32> -> vector<64x96xf32>
    %25 = vector.extract_strided_slice %24 {offsets = [0, 0], sizes = [64, 32], strides = [1, 1]} : vector<64x96xf32> to vector<64x32xf32>
    %26 = vector.extract_strided_slice %24 {offsets = [0, 32], sizes = [64, 32], strides = [1, 1]} : vector<64x96xf32> to vector<64x32xf32>
    %27 = vector.extract_strided_slice %24 {offsets = [0, 64], sizes = [64, 32], strides = [1, 1]} : vector<64x96xf32> to vector<64x32xf32>
    %c280 = arith.constant 280 : index
    %c0_10 = arith.constant 0 : index
    %28 = vector.load %arg2[%c280, %c0_10] : memref<408x128xf32, #tpu.memory_space<vmem>>, vector<128x32xf32>
    %29 = vector.shape_cast %25 : vector<64x32xf32> to vector<2x32x32xf32>
    %30 = vector.shape_cast %26 : vector<64x32xf32> to vector<2x32x32xf32>
    %31 = vector.shape_cast %27 : vector<64x32xf32> to vector<2x32x32xf32>
    %32 = vector.shape_cast %30 : vector<2x32x32xf32> to vector<2x1x32x32xf32>
    %33 = vector.shape_cast %32 : vector<2x1x32x32xf32> to vector<2x1x32x32xf32>
    %34 = vector.broadcast %33 : vector<2x1x32x32xf32> to vector<2x4x32x32xf32>
    %35 = vector.shape_cast %34 : vector<2x4x32x32xf32> to vector<2x128x32xf32>
    %36 = vector.shape_cast %28 : vector<128x32xf32> to vector<1x128x32xf32>
    %37 = vector.broadcast %36 : vector<1x128x32xf32> to vector<2x128x32xf32>
    %38 = arith.mulf %35, %37 : vector<2x128x32xf32>
    %39 = vector.shape_cast %31 : vector<2x32x32xf32> to vector<2x1x32x32xf32>
    %40 = vector.shape_cast %39 : vector<2x1x32x32xf32> to vector<2x1x32x32xf32>
    %41 = vector.broadcast %40 : vector<2x1x32x32xf32> to vector<2x4x32x32xf32>
    %42 = vector.shape_cast %41 : vector<2x4x32x32xf32> to vector<2x128x32xf32>
    %43 = vector.shape_cast %28 : vector<128x32xf32> to vector<1x128x32xf32>
    %44 = vector.broadcast %43 : vector<1x128x32xf32> to vector<2x128x32xf32>
    %45 = arith.mulf %42, %44 : vector<2x128x32xf32>
    "tpu.trace_start"() <{level = 10 : i32, message = "bqc,bkc->bqk"}> : () -> ()
    %cst_11 = arith.constant dense<0.000000e+00> : vector<2x32x128xf32>
    %46 = tpu.matmul %29, %38, %cst_11 {dimension_numbers = #tpu.dot_dimension_numbers<[2], [2], [1], [1], [0, 0, 0, 1, 1, 1], [0], [0]>} : vector<2x32x32xf32>, vector<2x128x32xf32>, vector<2x32x128xf32> -> vector<2x32x128xf32>
    "tpu.trace_stop"() : () -> ()
    %cst_12 = arith.constant dense<0xFF800000> : vector<2x32xf32>
    %47 = vector.multi_reduction <maximumf>, %46, %cst_12 [2] : vector<2x32x128xf32> to vector<2x32xf32>
    %48 = vector.shape_cast %47 : vector<2x32xf32> to vector<2x32x1xf32>
    %49 = vector.broadcast %48 : vector<2x32x1xf32> to vector<2x32x128xf32>
    %50 = arith.subf %46, %49 : vector<2x32x128xf32>
    %51 = math.exp %50 : vector<2x32x128xf32>
    "tpu.trace_start"() <{level = 10 : i32, message = "bqk,bkc->bqc"}> : () -> ()
    %cst_13 = arith.constant dense<0.000000e+00> : vector<2x32x32xf32>
    %52 = tpu.matmul %51, %45, %cst_13 {dimension_numbers = #tpu.dot_dimension_numbers<[2], [1], [1], [2], [0, 0, 0, 1, 1, 2], [0], [0]>} : vector<2x32x128xf32>, vector<2x128x32xf32>, vector<2x32x32xf32> -> vector<2x32x32xf32>
    "tpu.trace_stop"() : () -> ()
    %53 = vector.shape_cast %52 : vector<2x32x32xf32> to vector<64x32xf32>
    %54 = vector.shape_cast %51 : vector<2x32x128xf32> to vector<64x128xf32>
    %cst_14 = arith.constant dense<0.000000e+00> : vector<64x32xf32>
    %55 = tpu.matmul %54, %28, %cst_14 {dimension_numbers = #tpu.dot_dimension_numbers<[1], [0], [0], [1], [0, 0, 1, 1], [], []>} : vector<64x128xf32>, vector<128x32xf32>, vector<64x32xf32> -> vector<64x32xf32>
    %56 = tpu.reciprocal %55 : vector<64x32xf32> -> vector<64x32xf32>
    %57 = arith.mulf %53, %56 : vector<64x32xf32>
    %c32 = arith.constant 32 : index
    %c0_15 = arith.constant 0 : index
    %58 = vector.load %arg2[%c32, %c0_15] : memref<408x128xf32, #tpu.memory_space<vmem>>, vector<32x32xf32>
    %cst_16 = arith.constant dense<0.000000e+00> : vector<64x32xf32>
    %59 = tpu.matmul %57, %58, %cst_16 {dimension_numbers = #tpu.dot_dimension_numbers<[1], [0], [0], [1], [0, 0, 1, 1], [], []>} : vector<64x32xf32>, vector<32x32xf32>, vector<64x32xf32> -> vector<64x32xf32>
    %60 = arith.addf %0, %59 : vector<64x32xf32>
    %cst_17 = arith.constant dense<0.000000e+00> : vector<64xf32>
    %61 = vector.multi_reduction <add>, %60, %cst_17 [1] : vector<64x32xf32> to vector<64xf32>
    %62 = vector.shape_cast %61 : vector<64xf32> to vector<64x1xf32>
    %cst_18 = arith.constant 3.200000e+01 : f32
    %63 = vector.broadcast %cst_18 : f32 to vector<64x1xf32>
    %64 = arith.divf %62, %63 : vector<64x1xf32>
    %65 = vector.broadcast %64 : vector<64x1xf32> to vector<64x32xf32>
    %66 = arith.subf %60, %65 : vector<64x32xf32>
    %67 = arith.mulf %66, %66 : vector<64x32xf32>
    %cst_19 = arith.constant dense<0.000000e+00> : vector<64xf32>
    %68 = vector.multi_reduction <add>, %67, %cst_19 [1] : vector<64x32xf32> to vector<64xf32>
    %69 = vector.shape_cast %68 : vector<64xf32> to vector<64x1xf32>
    %cst_20 = arith.constant 3.200000e+01 : f32
    %70 = vector.broadcast %cst_20 : f32 to vector<64x1xf32>
    %71 = arith.divf %69, %70 : vector<64x1xf32>
    %cst_21 = arith.constant 9.99999974E-6 : f32
    %72 = vector.broadcast %cst_21 : f32 to vector<64x1xf32>
    %73 = arith.addf %71, %72 : vector<64x1xf32>
    %74 = math.rsqrt %73 : vector<64x1xf32>
    %75 = vector.broadcast %74 : vector<64x1xf32> to vector<64x32xf32>
    %76 = arith.mulf %66, %75 : vector<64x32xf32>
    %c240 = arith.constant 240 : index
    %c0_22 = arith.constant 0 : index
    %77 = vector.load %arg2[%c240, %c0_22] : memref<408x128xf32, #tpu.memory_space<vmem>>, vector<1x32xf32>
    %78 = vector.broadcast %77 : vector<1x32xf32> to vector<64x32xf32>
    %79 = arith.mulf %76, %78 : vector<64x32xf32>
    %c248 = arith.constant 248 : index
    %c0_23 = arith.constant 0 : index
    %80 = vector.load %arg2[%c248, %c0_23] : memref<408x128xf32, #tpu.memory_space<vmem>>, vector<1x32xf32>
    %81 = vector.broadcast %80 : vector<1x32xf32> to vector<64x32xf32>
    %82 = arith.addf %79, %81 : vector<64x32xf32>
    %c64 = arith.constant 64 : index
    %c0_24 = arith.constant 0 : index
    %83 = vector.load %arg2[%c64, %c0_24] : memref<408x128xf32, #tpu.memory_space<vmem>>, vector<32x64xf32>
    %cst_25 = arith.constant dense<0.000000e+00> : vector<64x64xf32>
    %84 = tpu.matmul %82, %83, %cst_25 {dimension_numbers = #tpu.dot_dimension_numbers<[1], [0], [0], [1], [0, 0, 1, 1], [], []>} : vector<64x32xf32>, vector<32x64xf32>, vector<64x64xf32> -> vector<64x64xf32>
    %c256 = arith.constant 256 : index
    %c0_26 = arith.constant 0 : index
    %85 = vector.load %arg2[%c256, %c0_26] : memref<408x128xf32, #tpu.memory_space<vmem>>, vector<1x64xf32>
    %86 = vector.broadcast %85 : vector<1x64xf32> to vector<64x64xf32>
    %87 = arith.addf %84, %86 : vector<64x64xf32>
    %cst_27 = arith.constant 0.000000e+00 : f32
    %88 = vector.broadcast %cst_27 : f32 to vector<64x64xf32>
    %89 = arith.maximumf %87, %88 : vector<64x64xf32>
    %c96 = arith.constant 96 : index
    %c0_28 = arith.constant 0 : index
    %90 = vector.load %arg2[%c96, %c0_28] : memref<408x128xf32, #tpu.memory_space<vmem>>, vector<64x64xf32>
    %cst_29 = arith.constant dense<0.000000e+00> : vector<64x64xf32>
    %91 = tpu.matmul %89, %90, %cst_29 {dimension_numbers = #tpu.dot_dimension_numbers<[1], [0], [0], [1], [0, 0, 1, 1], [], []>} : vector<64x64xf32>, vector<64x64xf32>, vector<64x64xf32> -> vector<64x64xf32>
    %c264 = arith.constant 264 : index
    %c0_30 = arith.constant 0 : index
    %92 = vector.load %arg2[%c264, %c0_30] : memref<408x128xf32, #tpu.memory_space<vmem>>, vector<1x64xf32>
    %93 = vector.broadcast %92 : vector<1x64xf32> to vector<64x64xf32>
    %94 = arith.addf %91, %93 : vector<64x64xf32>
    %cst_31 = arith.constant 0.000000e+00 : f32
    %95 = vector.broadcast %cst_31 : f32 to vector<64x64xf32>
    %96 = arith.maximumf %94, %95 : vector<64x64xf32>
    %c160 = arith.constant 160 : index
    %c0_32 = arith.constant 0 : index
    %97 = vector.load %arg2[%c160, %c0_32] : memref<408x128xf32, #tpu.memory_space<vmem>>, vector<64x32xf32>
    %cst_33 = arith.constant dense<0.000000e+00> : vector<64x32xf32>
    %98 = tpu.matmul %96, %97, %cst_33 {dimension_numbers = #tpu.dot_dimension_numbers<[1], [0], [0], [1], [0, 0, 1, 1], [], []>} : vector<64x64xf32>, vector<64x32xf32>, vector<64x32xf32> -> vector<64x32xf32>
    %c272 = arith.constant 272 : index
    %c0_34 = arith.constant 0 : index
    %99 = vector.load %arg2[%c272, %c0_34] : memref<408x128xf32, #tpu.memory_space<vmem>>, vector<1x32xf32>
    %100 = vector.broadcast %99 : vector<1x32xf32> to vector<64x32xf32>
    %101 = arith.addf %98, %100 : vector<64x32xf32>
    %102 = arith.addf %60, %101 : vector<64x32xf32>
    %c0_35 = arith.constant 0 : index
    %c0_36 = arith.constant 0 : index
    %103 = vector.load %arg3[%c0_35, %c0_36] : memref<64x32xf32, #tpu.memory_space<vmem>>, vector<64x32xf32>
    tpu.vector_store %arg3[%c0_35, %c0_36], %102 {strides = array<i32>} : memref<64x32xf32, #tpu.memory_space<vmem>>, vector<64x32xf32>,
    return
  }
  func.func @transform_0(%arg0: i32) -> (i32, i32) {
    %c0_i32 = arith.constant 0 : i32
    %c0_i32_0 = arith.constant 0 : i32
    %c0_i32_1 = arith.constant 0 : i32
    return %c0_i32, %c0_i32_0 : i32, i32
  }
  func.func @transform_1(%arg0: i32) -> (i32, i32) {
    %c0_i32 = arith.constant 0 : i32
    %c0_i32_0 = arith.constant 0 : i32
    %c0_i32_1 = arith.constant 0 : i32
    return %c0_i32, %c0_i32_0 : i32, i32
  }
  func.func @transform_2(%arg0: i32) -> (i32, i32) {
    %c0_i32 = arith.constant 0 : i32
    %c0_i32_0 = arith.constant 0 : i32
    %c0_i32_1 = arith.constant 0 : i32
    return %c0_i32, %c0_i32_0 : i32, i32
  }
}

</mosaic_0001>

<bundles_post_ra>
// kernel: tpu_custom_call.1
= control target key start
LH: loop header
LB: loop body
LE: loop exit
PB: predicated region body
PF: predicated region fallthrough
CT: control target
= control target key end

     0   :  { %7 = vsyncpa [#allocation3], 0  ;;  %s1935_s12 = smov [#allocation2]   ;;  %s1936_s14 = smov 128   ;;  %s2746_s0 = inlined_call_operand.vmem [shape: f32[64,32], index: 0, kind: input, shape index: {}]   ;;  %s2747_s1 = inlined_call_operand.hbm [shape: f32[408,128], index: 1, kind: input, shape index: {}]   ;;  %s2748_s2 = inlined_call_operand.vmem [shape: f32[64,32], index: 2, kind: output, shape index: {}]  }
   0x1   :  { %s14_s11 = sshll.u32 %s2747_s1, 4  ;;  %s16_s13 = sshll.u32 %s1935_s12, 4  ;;  %s15_s11 = int_to_ptr.hbm [resolvable:$true] %s14_s11  ;;  %s17_s13 = int_to_ptr.vmem [resolvable:$true] %s16_s13 }
   0x2   :  { %s1937_s15 = smov 8  }
   0x3   :  { %22 = dma.hbm_to_vmem [thread:$0]  %s15_s11, 6528, %s17_s13, [#allocation3], %s1936_s14, %s1936_s14, %s1937_s15  }
   0x4   :  { %1933 = dma.done.wait [#allocation3], 6528  }
   0x5   :  { %1934 = vsyncadd [#allocation3], 4294960768  ;;  %vm35_vm0 = vcmask 261120   ;;  %v31_v0 = vld [vmem:[%s2746_s0 + $0x20] sm:$0xff]  ;;  %v29_v1 = vld [vmem:[%s2746_s0 + $0x10] sm:$0xff]  ;;  %v1938_v14 = vmov 32.0  }
   0x6   :  { %v27_v2 = vld [vmem:[%s2746_s0] sm:$0xff]  ;;  %v48_v3 = vsel %vm35_vm0, %v31_v0, 0.0  ;;  %v42_v4 = vsel %vm35_vm0, %v29_v1, 0.0  ;;  %v32_v6 = vld [vmem:[%s2746_s0 + $0x28] sm:$0xff]  ;;  %v30_v8 = vld [vmem:[%s2746_s0 + $0x18] sm:$0xff]  ;;  %1835 = vrcp.f32 %v1938_v14  ;;  %s1939_s3 = smov 32  }
   0x7   :  { %v36_v5 = vsel %vm35_vm0, %v27_v2, 0.0  ;;  %49 = vadd.xlane.f32.xlu2 %v48_v3  ;;  %43 = vadd.xlane.f32.xlu1 %v42_v4  ;;  %v28_v7 = vld [vmem:[%s2746_s0 + $0x8] sm:$0xff]  ;;  %v51_v9 = vsel %vm35_vm0, %v32_v6, 0.0  ;;  %v45_v10 = vsel %vm35_vm0, %v30_v8, 0.0  ;;  %v33_v12 = vld [vmem:[%s2746_s0 + $0x30] sm:$0xff]  ;;  %v34_v40 = vld [vmem:[%s2746_s0 + $0x38] sm:$0xff] }
   0x8   :  { %37 = vadd.xlane.f32.xlu0 %v36_v5  ;;  %v39_v11 = vsel %vm35_vm0, %v28_v7, 0.0  ;;  %v54_v13 = vsel %vm35_vm0, %v33_v12, 0.0  ;;  %v57_v45 = vsel %vm35_vm0, %v34_v40, 0.0  ;;  %v242_v58 = vld [vmem:[#allocation2 + $0x18] sm:$0xff]  ;;  %v241_v59 = vld [vmem:[#allocation2 + $0x10] sm:$0xff]  ;;  %v240_v61 = vld [vmem:[#allocation2 + $0x8] sm:$0xff] }
   0x9   :  { %279 = vmatpush.msra.mxu1 %v242_v58  ;;  %v2036_v60 = vld [vmem:[#allocation2 + $0x190] sm:$0xff]  ;;  %v239_v62 = vld [vmem:[#allocation2] sm:$0xff]  ;;  %v2044_v3 = vld [vmem:[#allocation2 + $0x188] sm:$0xff]  ;;  %s1940_s4 = smov 96   ;;  %s1941_s5 = smov 64  }
   0xa   :  { %968 = vmatpush.msra.mxu0 %v2036_v60 }
   0xb   :  { %280 = vmatpush.msra.mxu1 %v241_v59 }
   0xc   :  { %v1836_v15 = vpop.eup %1835  ;;  %969 = vmatpush.msra.mxu0 %v2044_v3 }
   0xd   :  { %v61_v16 = vmul.f32 32.0, %v1836_v15  ;;  %vm65_vm1 = vweird.f32 %v1836_v15  ;;  %281 = vmatpush.msra.mxu1 %v240_v61 }
   0xf   :  { %52 = vadd.xlane.f32.xlu2 %v51_v9  ;;  %46 = vadd.xlane.f32.xlu1 %v45_v10  ;;  %v62_v17 = vsub.f32 1.0, %v61_v16  ;;  %v2055_v9 = vld [vmem:[#allocation2 + $0x158] sm:$0xff] }
  0x10   :  { %40 = vadd.xlane.f32.xlu0 %v39_v11  ;;  %282 = vmatpush.msra.mxu1 %v239_v62  ;;  %v2057_v10 = vld [vmem:[#allocation2 + $0x178] sm:$0xff] }
  0x11   :  { %v63_v18 = vmul.f32 %v1836_v15, %v62_v17 }
  0x13   :  { %v64_v19 = vadd.f32 %v1836_v15, %v63_v18 }
  0x15   :  { %v1988_v20 = vsel %vm65_vm1, %v1836_v15, %v64_v19 }
  0x17   :  { %55 = vadd.xlane.f32.xlu1 %v54_v13  ;;  %v2065_v13 = vld [vmem:[#allocation2 + $0x180] sm:$0xff] }
  0x18   :  { %970 = vmatpush.msra.mxu0 %v2065_v13 }
  0x1a   :  { %971 = vmatpush.msra.mxu0 %v2057_v10 }
  0x7a   :  { %v50_v21 = vpop.xlane.xlu2 %49  ;;  %v44_v22 = vpop.xlane.xlu1 %43 }
  0x7b   :  { %v69_v23 = vmul.f32 %v1988_v20, %v44_v22  ;;  %v38_v24 = vpop.xlane.xlu0 %37  ;;  %v71_v36 = vmul.f32 %v1988_v20, %v50_v21 }
  0x7c   :  { %v67_v25 = vmul.f32 %v1988_v20, %v38_v24  ;;  %v2082_v24 = vld [vmem:[#allocation2 + $0x160] sm:$0xff] }
  0x7d   :  { %v1992_v26 = vsub.f32 %v29_v1, %v69_v23  ;;  %v2015_v43 = vsub.f32 %v31_v0, %v71_v36  ;;  %v2080_v23 = vld [vmem:[#allocation2 + $0x140] sm:$0xff] }
  0x7e   :  { %v1994_v27 = vsub.f32 %v27_v2, %v67_v25  ;;  %v2042_v2 = vld [vmem:[#allocation2 + $0x170] sm:$0xff] }
  0x7f   :  { %v85_v28 = vmul.f32 %v1992_v26, %v1992_v26  ;;  %v87_v51 = vmul.f32 %v2015_v43, %v2015_v43  ;;  %972 = vmatpush.msra.mxu0 %v2042_v2 }
  0x80   :  { %v83_v29 = vmul.f32 %v1994_v27, %v1994_v27 }
  0x81   :  { %v97_v30 = vsel %vm35_vm0, %v85_v28, 0.0  ;;  %v103_v54 = vsel %vm35_vm0, %v87_v51, 0.0  ;;  %v2108_v51 = vld [vmem:[#allocation2 + $0x128] sm:$0xff] }
  0x82   :  { %v53_v31 = vpop.xlane.xlu2 %52  ;;  %98 = vadd.xlane.f32.xlu1 %v97_v30  ;;  %v91_v32 = vsel %vm35_vm0, %v83_v29, 0.0  ;;  %v47_v33 = vpop.xlane.xlu1 %46  ;;  %v2086_v29 = vld [vmem:[#allocation2 + $0x168] sm:$0xff] }
  0x83   :  { %v72_v34 = vmul.f32 %v1988_v20, %v53_v31  ;;  %92 = vadd.xlane.f32.xlu0 %v91_v32  ;;  %v41_v35 = vpop.xlane.xlu0 %40  ;;  %v70_v38 = vmul.f32 %v1988_v20, %v47_v33  ;;  %973 = vmatpush.msra.mxu0 %v2086_v29 }
  0x84   :  { %v68_v37 = vmul.f32 %v1988_v20, %v41_v35 }
  0x85   :  { %v2006_v39 = vsub.f32 %v32_v6, %v72_v34  ;;  %v2017_v44 = vsub.f32 %v30_v8, %v70_v38  ;;  %974 = vmatpush.msra.mxu0 %v2082_v24 }
  0x86   :  { %v2011_v41 = vsub.f32 %v28_v7, %v68_v37 }
  0x87   :  { %v88_v42 = vmul.f32 %v2006_v39, %v2006_v39  ;;  %v86_v52 = vmul.f32 %v2017_v44, %v2017_v44  ;;  %975 = vmatpush.msra.mxu0 %v2055_v9 }
  0x88   :  { %v84_v46 = vmul.f32 %v2011_v41, %v2011_v41 }
  0x89   :  { %v106_v47 = vsel %vm35_vm0, %v88_v42, 0.0  ;;  %v100_v55 = vsel %vm35_vm0, %v86_v52, 0.0  ;;  %v2110_v52 = vld [vmem:[#allocation2 + $0x148] sm:$0xff] }
  0x8a   :  { %107 = vadd.xlane.f32.xlu1 %v106_v47  ;;  %v94_v48 = vsel %vm35_vm0, %v84_v46, 0.0  ;;  %v56_v49 = vpop.xlane.xlu1 %55 }
  0x8b   :  { %58 = vadd.xlane.f32.xlu0 %v57_v45  ;;  %95 = vadd.xlane.f32.xlu2 %v94_v48  ;;  %v73_v50 = vmul.f32 %v1988_v20, %v56_v49  ;;  %v2105_v48 = vld [vmem:[#allocation2 + $0xe0] ss:$0 sm:$0xff] }
  0x8d   :  { %v2029_v53 = vsub.f32 %v33_v12, %v73_v50 }
  0x8f   :  { %v89_v56 = vmul.f32 %v2029_v53, %v2029_v53 }
  0x91   :  { %v109_v57 = vsel %vm35_vm0, %v89_v56, 0.0 }
  0x93   :  { %104 = vadd.xlane.f32.xlu0 %v103_v54  ;;  %101 = vadd.xlane.f32.xlu2 %v100_v55  ;;  %v2112_v54 = vld [vmem:[#allocation2 + $0x150] sm:$0xff] }
  0x94   :  { %976 = vmatpush.msra.mxu0 %v2112_v54 }
  0x96   :  { %977 = vmatpush.msra.mxu0 %v2110_v52 }
  0x98   :  { %978 = vmatpush.msra.mxu0 %v2080_v23 }
  0x9b   :  { %110 = vadd.xlane.f32.xlu2 %v109_v57  ;;  %v2117_v57 = vld [vmem:[#allocation2 + $0xe8] ss:$0 sm:$0xff] }
  0xa3   :  { %370 = vrot.lane.b32.xlu1 %v2036_v60, %s1939_s3 }
  0xab   :  { %362 = vrot.lane.b32.xlu1 %v2042_v2, %s1939_s3 }
  0xb3   :  { %368 = vrot.lane.b32.xlu2 %v2044_v3, %s1939_s3  ;;  %356 = vrot.lane.b32.xlu1 %v2055_v9, %s1939_s3 }
  0xbb   :  { %364 = vrot.lane.b32.xlu2 %v2057_v10, %s1939_s3  ;;  %350 = vrot.lane.b32.xlu1 %v2080_v23, %s1939_s3 }
  0xc3   :  { %358 = vrot.lane.b32.xlu2 %v2082_v24, %s1939_s3  ;;  %344 = vrot.lane.b32.xlu1 %v2108_v51, %s1939_s3 }
  0xcb   :  { %352 = vrot.lane.b32.xlu2 %v2110_v52, %s1939_s3 }
  0xf5   :  { %v99_v63 = vpop.xlane.xlu1 %98 }
  0xf6   :  { %v117_v0 = vmul.f32 %v99_v63, %v1988_v20  ;;  %v93_v1 = vpop.xlane.xlu0 %92 }
  0xf7   :  { %v115_v4 = vmul.f32 %v93_v1, %v1988_v20 }
  0xf8   :  { %v2051_v5 = vadd.f32 1e-05, %v117_v0 }
  0xf9   :  { %v123_v6 = vadd.f32 1e-05, %v115_v4 }
  0xfa   :  { %1837 = vrsqrt.f32 %v2051_v5  ;;  %vm157_vm7 = vweird.f32 %v2051_v5 }
  0xfb   :  { %1839 = vrsqrt.f32 %v123_v6  ;;  %vm137_vm3 = vweird.f32 %v123_v6 }
  0xfd   :  { %v108_v25 = vpop.xlane.xlu1 %107 }
  0xfe   :  { %v96_v7 = vpop.xlane.xlu2 %95  ;;  %v59_v8 = vpop.xlane.xlu0 %58  ;;  %v120_v38 = vmul.f32 %v108_v25, %v1988_v20 }
  0xff   :  { %v116_v11 = vmul.f32 %v96_v7, %v1988_v20  ;;  %v74_v12 = vmul.f32 %v1988_v20, %v59_v8 }
 0x100   :  { %v2067_v14 = vpop.eup %1837  ;;  %v2114_v55 = vadd.f32 1e-05, %v120_v38 }
 0x101   :  { %v1840_v15 = vpop.eup %1839  ;;  %v2070_v16 = vadd.f32 1e-05, %v116_v11  ;;  %v2072_v17 = vsub.f32 %v34_v40, %v74_v12  ;;  %v152_v18 = vmul.f32 %v2067_v14, %v2051_v5  ;;  %vm158_vm8 = vweird.f32 %v2067_v14 }
 0x102   :  { %v132_v19 = vmul.f32 %v1840_v15, %v123_v6  ;;  %vm138_vm2 = vweird.f32 %v1840_v15  ;;  %vm2139_vm10 = vmor %vm157_vm7, %vm158_vm8 }
 0x103   :  { %1841 = vrsqrt.f32 %v2070_v16  ;;  %v90_v21 = vmul.f32 %v2072_v17, %v2072_v17  ;;  %v153_v30 = vmul.f32 %v2067_v14, %v152_v18  ;;  %vm139_vm4 = vmor %vm137_vm3, %vm138_vm2  ;;  %vm147_vm5 = vweird.f32 %v2070_v16 }
 0x104   :  { %v133_v22 = vmul.f32 %v1840_v15, %v132_v19  ;;  %vm187_vm2 = vweird.f32 %v2114_v55 }
 0x105   :  { %v112_v28 = vsel %vm35_vm0, %v90_v21, 0.0  ;;  %v154_v42 = vmul.f32 0.5, %v153_v30 }
 0x106   :  { %v134_v31 = vmul.f32 0.5, %v133_v22  ;;  %v102_v32 = vpop.xlane.xlu2 %101  ;;  %113 = vadd.xlane.f32.xlu0 %v112_v28  ;;  %v105_v33 = vpop.xlane.xlu0 %104  ;;  %v2153_v22 = vld [vmem:[#allocation2 + $0x130] sm:$0xff] }
 0x107   :  { %v118_v34 = vmul.f32 %v102_v32, %v1988_v20  ;;  %v119_v35 = vmul.f32 %v105_v33, %v1988_v20  ;;  %v155_v58 = vsub.f32 1.5, %v154_v42 }
 0x108   :  { %v135_v36 = vsub.f32 1.5, %v134_v31 }
 0x109   :  { %v1842_v37 = vpop.eup %1841  ;;  %v2098_v40 = vadd.f32 1e-05, %v118_v34  ;;  %v2101_v47 = vadd.f32 1e-05, %v119_v35  ;;  %v156_v7 = vmul.f32 %v2067_v14, %v155_v58 }
 0x10a   :  { %v136_v45 = vmul.f32 %v1840_v15, %v135_v36  ;;  %v142_v46 = vmul.f32 %v1842_v37, %v2070_v16  ;;  %vm148_vm6 = vweird.f32 %v1842_v37 }
 0x10b   :  { %1843 = vrsqrt.f32 %v2098_v40  ;;  %vm2130_vm9 = vmor %vm147_vm5, %vm148_vm6  ;;  %v160_v25 = vsel %vm2139_vm10, %v2067_v14, %v156_v7  ;;  %vm167_vm11 = vweird.f32 %v2098_v40  ;;  %vm177_vm14 = vweird.f32 %v2101_v47 }
 0x10c   :  { %v140_v49 = vsel %vm139_vm4, %v1840_v15, %v136_v45  ;;  %v143_v50 = vmul.f32 %v1842_v37, %v142_v46  ;;  %1845 = vrsqrt.f32 %v2101_v47  ;;  %v2145_v15 = vld [vmem:[#allocation2 + $0x138] sm:$0xff]  ;;  %v213_v14 = vmul.f32 %v160_v25, %v1992_v26 }
 0x10d   :  { %v211_v56 = vmul.f32 %v140_v49, %v1994_v27  ;;  %1847 = vrsqrt.f32 %v2114_v55  ;;  %979 = vmatpush.msra.mxu0 %v2145_v15  ;;  %348 = vrot.lane.b32.xlu2 %v2145_v15, %s1939_s3 }
 0x10e   :  { %v144_v59 = vmul.f32 0.5, %v143_v50  ;;  %v111_v61 = vpop.xlane.xlu2 %110  ;;  %v223_v38 = vmul.f32 %v2105_v48, %v213_v14 }
 0x10f   :  { %v221_v62 = vmul.f32 %v2105_v48, %v211_v56  ;;  %v121_v1 = vmul.f32 %v111_v61, %v1988_v20  ;;  %980 = vmatpush.msra.mxu0 %v2153_v22 }
 0x110   :  { %v145_v27 = vsub.f32 1.5, %v144_v59  ;;  %v233_v46 = vadd.f32 %v2117_v57, %v223_v38 }
 0x111   :  { %v1844_v63 = vpop.eup %1843  ;;  %v231_v4 = vadd.f32 %v2117_v57, %v221_v62  ;;  %v2150_v19 = vadd.f32 1e-05, %v121_v1  ;;  %981 = vmatpush.msra.mxu0 %v2108_v51 }
 0x112   :  { %v1846_v6 = vpop.eup %1845  ;;  %v146_v5 = vmul.f32 %v1842_v37, %v145_v27  ;;  %v162_v8 = vmul.f32 %v1844_v63, %v2098_v40  ;;  %vm168_vm12 = vweird.f32 %v1844_v63 }
 0x113   :  { %v172_v12 = vmul.f32 %v1846_v6, %v2101_v47  ;;  %1661 = vmatmul.msk.f32.vlgmr.msra.gmra.mxu1 %vm35_vm0, %v231_v4  ;;  %v1848_v31 = vpop.eup %1847  ;;  %1849 = vrsqrt.f32 %v2150_v19  ;;  %vm169_vm13 = vmor %vm167_vm11, %vm168_vm12  ;;  %vm178_vm15 = vweird.f32 %v1846_v6  ;;  %vm197_vm5 = vweird.f32 %v2150_v19 }
 0x114   :  { %v150_v16 = vsel %vm2130_vm9, %v1842_v37, %v146_v5  ;;  %v163_v18 = vmul.f32 %v1844_v63, %v162_v8  ;;  %v182_v34 = vmul.f32 %v1848_v31, %v2114_v55  ;;  %v2171_v37 = vld [vmem:[#allocation2 + $0x120] sm:$0xff]  ;;  %vm179_vm1 = vmor %vm177_vm14, %vm178_vm15  ;;  %vm188_vm3 = vweird.f32 %v1848_v31 }
 0x115   :  { %v212_v21 = vmul.f32 %v150_v16, %v2011_v41  ;;  %v173_v30 = vmul.f32 %v1846_v6, %v172_v12  ;;  %982 = vmatpush.msra.mxu0 %v2171_v37  ;;  %342 = vrot.lane.b32.xlu2 %v2171_v37, %s1939_s3  ;;  %vm189_vm4 = vmor %vm187_vm2, %vm188_vm3 }
 0x116   :  { %v164_v28 = vmul.f32 0.5, %v163_v18  ;;  %v183_v40 = vmul.f32 %v1848_v31, %v182_v34 }
 0x117   :  { %v222_v32 = vmul.f32 %v2105_v48, %v212_v21  ;;  %v174_v36 = vmul.f32 0.5, %v173_v30  ;;  %v369_v30 = vpop.permute.xlu2 %368 }
 0x118   :  { %v165_v33 = vsub.f32 1.5, %v164_v28  ;;  %v184_v50 = vmul.f32 0.5, %v183_v40  ;;  %v371_v40 = vpop.permute.xlu1 %370 }
 0x119   :  { %v232_v41 = vadd.f32 %v2117_v57, %v222_v32  ;;  %v175_v45 = vsub.f32 1.5, %v174_v36  ;;  %v1850_v26 = vpop.eup %1849 }
 0x11a   :  { %v166_v35 = vmul.f32 %v1844_v63, %v165_v33  ;;  %366 = vrot.lane.b32.xlu0 %v2065_v13, %s1939_s3  ;;  %v192_v58 = vmul.f32 %v1850_v26, %v2150_v19  ;;  %v185_v61 = vsub.f32 1.5, %v184_v50  ;;  %vm198_vm6 = vweird.f32 %v1850_v26 }
 0x11b   :  { %1662 = vmatmul.msk.f32.gmra.mxu1 %vm35_vm0, %v232_v41  ;;  %v176_v56 = vmul.f32 %v1846_v6, %v175_v45  ;;  %vm199_vm7 = vmor %vm197_vm5, %vm198_vm6 }
 0x11c   :  { %v170_v42 = vsel %vm169_vm13, %v1844_v63, %v166_v35  ;;  %v193_v47 = vmul.f32 %v1850_v26, %v192_v58  ;;  %v186_v63 = vmul.f32 %v1848_v31, %v185_v61 }
 0x11d   :  { %v214_v49 = vmul.f32 %v170_v42, %v2017_v44  ;;  %v180_v62 = vsel %vm179_vm1, %v1846_v6, %v176_v56  ;;  %v2215_v42 = vld [vmem:[#allocation2 + $0x118] sm:$0xff] }
 0x11e   :  { %v215_v27 = vmul.f32 %v180_v62, %v2015_v43  ;;  %v194_v0 = vmul.f32 0.5, %v193_v47  ;;  %v190_v4 = vsel %vm189_vm4, %v1848_v31, %v186_v63  ;;  %983 = vmatpush.msra.mxu0 %v2215_v42 }
 0x11f   :  { %v224_v59 = vmul.f32 %v2105_v48, %v214_v49  ;;  %v216_v7 = vmul.f32 %v190_v4, %v2006_v39  ;;  %v2206_v14 = vpop.permute.xlu2 %364 }
 0x120   :  { %v225_v1 = vmul.f32 %v2105_v48, %v215_v27  ;;  %v195_v6 = vsub.f32 1.5, %v194_v0 }
 0x121   :  { %v234_v44 = vadd.f32 %v2117_v57, %v224_v59  ;;  %v226_v5 = vmul.f32 %v2105_v48, %v216_v7 }
 0x122   :  { %360 = vrot.lane.b32.xlu0 %v2086_v29, %s1939_s3  ;;  %v235_v55 = vadd.f32 %v2117_v57, %v225_v1  ;;  %v196_v43 = vmul.f32 %v1850_v26, %v195_v6 }
 0x123   :  { %1663 = vmatmul.msk.f32.gmra.mxu1 %vm35_vm0, %v233_v46  ;;  %v236_v11 = vadd.f32 %v2117_v57, %v226_v5 }
 0x124   :  { %v200_v8 = vsel %vm199_vm7, %v1850_v26, %v196_v43 }
 0x125   :  { %v217_v12 = vmul.f32 %v200_v8, %v2029_v53 }
 0x127   :  { %v227_v16 = vmul.f32 %v2105_v48, %v217_v12  ;;  %v2232_v58 = vpop.permute.xlu2 %358 }
 0x129   :  { %v237_v39 = vadd.f32 %v2117_v57, %v227_v16 }
 0x12a   :  { %354 = vrot.lane.b32.xlu0 %v2112_v54, %s1939_s3 }
 0x12b   :  { %1664 = vmatmul.msk.f32.gmra.mxu1 %vm35_vm0, %v234_v44 }
 0x12f   :  { %v2243_v27 = vpop.permute.xlu2 %352 }
 0x132   :  { %346 = vrot.lane.b32.xlu0 %v2153_v22, %s1939_s3 }
 0x133   :  { %1665 = vmatmul.msk.f32.gmra.mxu1 %vm35_vm0, %v235_v55 }
 0x13b   :  { %1666 = vmatmul.msk.f32.gmra.mxu1 %vm35_vm0, %v236_v11 }
 0x143   :  { %1667 = vmatmul.msk.f32.gmra.mxu1 %vm35_vm0, %v237_v39 }
 0x179   :  { %v114_v18 = vpop.xlane.xlu0 %113 }
 0x17a   :  { %v122_v19 = vmul.f32 %v114_v18, %v1988_v20 }
 0x17c   :  { %v130_v21 = vadd.f32 1e-05, %v122_v19 }
 0x17e   :  { %1851 = vrsqrt.f32 %v130_v21  ;;  %vm207_vm9 = vweird.f32 %v130_v21 }
 0x184   :  { %v1852_v25 = vpop.eup %1851 }
 0x185   :  { %v202_v28 = vmul.f32 %v1852_v25, %v130_v21  ;;  %vm208_vm8 = vweird.f32 %v1852_v25 }
 0x186   :  { %vm209_vm10 = vmor %vm207_vm9, %vm208_vm8 }
 0x187   :  { %v203_v31 = vmul.f32 %v1852_v25, %v202_v28 }
 0x189   :  { %v204_v32 = vmul.f32 0.5, %v203_v31 }
 0x18b   :  { %v205_v33 = vsub.f32 1.5, %v204_v32 }
 0x18c   :  { %v367_v26 = vpop.permute.xlu0 %366 }
 0x18d   :  { %v206_v53 = vmul.f32 %v1852_v25, %v205_v33 }
 0x18f   :  { %v210_v41 = vsel %vm209_vm10, %v1852_v25, %v206_v53  ;;  %v349_v25 = vpop.permute.xlu2 %348 }
 0x190   :  { %v2208_v34 = vpop.f32.mrf.mxu1  ;;  %v218_v35 = vmul.f32 %v210_v41, %v2072_v17 }
 0x191   :  { %v400_v36 = vmul.f32 %v2206_v14, %v2208_v34 }
 0x192   :  { %v228_v38 = vmul.f32 %v2105_v48, %v218_v35  ;;  %v2224_v48 = vpop.permute.xlu1 %362 }
 0x193   :  { %540 = vrot.lane.b32.xlu0 %v400_v36, %s1940_s4 }
 0x194   :  { %v238_v45 = vadd.f32 %v2117_v57, %v228_v38  ;;  %v361_v49 = vpop.permute.xlu0 %360 }
 0x196   :  { %1668 = vmatmul.msk.f32.gmra.mxu1 %vm35_vm0, %v238_v45 }
 0x197   :  { %v343_v53 = vpop.permute.xlu2 %342 }
 0x198   :  { %v2220_v46 = vpop.f32.mrf.mxu1 }
 0x199   :  { %v401_v17 = vmul.f32 %v367_v26, %v2220_v46  ;;  %v397_v62 = vmul.f32 %v2232_v58, %v2220_v46 }
 0x19a   :  { %v357_v59 = vpop.permute.xlu1 %356 }
 0x19b   :  { %542 = vrot.lane.b32.xlu2 %v401_v17, %s1940_s4  ;;  %v396_v44 = vmul.f32 %v357_v59, %v2208_v34 }
 0x19c   :  { %v355_v4 = vpop.permute.xlu0 %354 }
 0x1a0   :  { %v2226_v50 = vpop.f32.mrf.mxu1 }
 0x1a1   :  { %v402_v56 = vmul.f32 %v369_v30, %v2226_v50  ;;  %v398_v57 = vmul.f32 %v361_v49, %v2226_v50  ;;  %v394_v0 = vmul.f32 %v2243_v27, %v2226_v50 }
 0x1a2   :  { %v351_v43 = vpop.permute.xlu1 %350 }
 0x1a3   :  { %544 = vrot.lane.b32.xlu1 %v402_v56, %s1940_s4  ;;  %536 = vrot.lane.b32.xlu2 %v398_v57, %s1940_s4  ;;  %v393_v11 = vmul.f32 %v351_v43, %v2220_v46 }
 0x1a4   :  { %v2267_v12 = vpop.permute.xlu0 %346 }
 0x1a8   :  { %v2234_v61 = vpop.f32.mrf.mxu1 }
 0x1a9   :  { %v403_v47 = vmul.f32 %v371_v40, %v2234_v61  ;;  %v399_v6 = vmul.f32 %v2224_v48, %v2234_v61  ;;  %v395_v7 = vmul.f32 %v355_v4, %v2234_v61  ;;  %v391_v16 = vmul.f32 %v2267_v12, %v2234_v61 }
 0x1aa   :  { %v345_v18 = vpop.permute.xlu1 %344 }
 0x1ab   :  { %534 = vrot.lane.b32.xlu1 %v397_v62, %s1940_s4  ;;  %546 = vrot.lane.b32.xlu0 %v403_v47, %s1940_s4  ;;  %v390_v19 = vmul.f32 %v345_v18, %v2226_v50 }
 0x1ac   :  { %532 = vrot.lane.b32.xlu2 %v396_v44, %s1940_s4  ;;  %v389_v44 = vmul.f32 %v343_v53, %v2220_v46 }
 0x1b0   :  { %v2245_v63 = vpop.f32.mrf.mxu1 }
 0x1b1   :  { %v412_v21 = vmul.f32 %v357_v59, %v2245_v63  ;;  %v416_v35 = vmul.f32 %v2206_v14, %v2245_v63 }
 0x1b3   :  { %528 = vrot.lane.b32.xlu1 %v394_v0, %s1940_s4  ;;  %340 = vrot.lane.b32.xlu0 %v2215_v42, %s1939_s3 }
 0x1b8   :  { %v2252_v1 = vpop.f32.mrf.mxu1 }
 0x1b9   :  { %v417_v55 = vmul.f32 %v367_v26, %v2252_v1  ;;  %v409_v41 = vmul.f32 %v351_v43, %v2252_v1  ;;  %v392_v26 = vmul.f32 %v349_v25, %v2208_v34  ;;  %v413_v57 = vmul.f32 %v2232_v58, %v2252_v1 }
 0x1bb   :  { %538 = vrot.lane.b32.xlu1 %v399_v6, %s1940_s4  ;;  %663 = vrot.lane.b32.xlu2 %v417_v55, %s1940_s4 }
 0x1bc   :  { %530 = vrot.lane.b32.xlu0 %v395_v7, %s1940_s4 }
 0x1c0   :  { %v2261_v5 = vpop.f32.mrf.mxu1 }
 0x1c1   :  { %v418_v8 = vmul.f32 %v369_v30, %v2261_v5  ;;  %v414_v39 = vmul.f32 %v361_v49, %v2261_v5  ;;  %v406_v45 = vmul.f32 %v345_v18, %v2261_v5  ;;  %v410_v58 = vmul.f32 %v2243_v27, %v2261_v5 }
 0x1c3   :  { %665 = vrot.lane.b32.xlu1 %v418_v8, %s1940_s4  ;;  %526 = vrot.lane.b32.xlu2 %v393_v11, %s1940_s4 }
 0x1cb   :  { %657 = vrot.lane.b32.xlu2 %v414_v39, %s1940_s4  ;;  %522 = vrot.lane.b32.xlu1 %v391_v16, %s1940_s4 }
 0x1d3   :  { %520 = vrot.lane.b32.xlu2 %v390_v19, %s1940_s4  ;;  %653 = vrot.lane.b32.xlu1 %v412_v21, %s1940_s4 }
 0x205   :  { %v541_v33 = vpop.permute.xlu0 %540 }
 0x213   :  { %v2278_v28 = vpop.f32.mrf.mxu1 }
 0x214   :  { %v411_v30 = vmul.f32 %v355_v4, %v2278_v28  ;;  %v419_v31 = vmul.f32 %v371_v40, %v2278_v28  ;;  %v543_v40 = vpop.permute.xlu2 %542  ;;  %v415_v62 = vmul.f32 %v2224_v48, %v2278_v28  ;;  %v407_v4 = vmul.f32 %v2267_v12, %v2278_v28 }
 0x215   :  { %v545_v32 = vpop.permute.xlu1 %544 }
 0x216   :  { %651 = vrot.lane.b32.xlu2 %v411_v30, %s1940_s4  ;;  %667 = vrot.lane.b32.xlu0 %v419_v31, %s1940_s4 }
 0x21c   :  { %v537_v56 = vpop.permute.xlu2 %536 }
 0x21d   :  { %v535_v36 = vpop.permute.xlu1 %534  ;;  %v547_v38 = vpop.permute.xlu0 %546 }
 0x21e   :  { %647 = vrot.lane.b32.xlu2 %v409_v41, %s1940_s4  ;;  %661 = vrot.lane.b32.xlu0 %v416_v35, %s1940_s4 }
 0x21f   :  { %1669 = vmatpush.xpose.msk.msrb.mxu1 %vm35_vm0, %v547_v38 }
 0x223   :  { %1670 = vmatpush.xpose.msk.msrb.mxu1 %vm35_vm0, %v545_v32 }
 0x224   :  { %v533_v47 = vpop.permute.xlu2 %532 }
 0x225   :  { %v529_v17 = vpop.permute.xlu1 %528  ;;  %v341_v49 = vpop.permute.xlu0 %340 }
 0x226   :  { %641 = vrot.lane.b32.xlu2 %v406_v45, %s1940_s4  ;;  %524 = vrot.lane.b32.xlu0 %v392_v26, %s1940_s4  ;;  %v388_v14 = vmul.f32 %v341_v49, %v2208_v34 }
 0x227   :  { %1671 = vmatpush.xpose.msk.msrb.mxu1 %vm35_vm0, %v543_v40 }
 0x228   :  { %516 = vrot.lane.b32.xlu1 %v388_v14, %s1940_s4 }
 0x22b   :  { %1672 = vmatpush.xpose.msk.msrb.mxu1 %vm35_vm0, %v541_v33 }
 0x22c   :  { %v664_v48 = vpop.permute.xlu2 %663 }
 0x22d   :  { %v539_v59 = vpop.permute.xlu1 %538 }
 0x22e   :  { %450 = vrot.lane.b32.xlu2 %v2036_v60, %s1941_s5  ;;  %655 = vrot.lane.b32.xlu0 %v413_v57, %s1940_s4  ;;  %v408_v60 = vmul.f32 %v349_v25, %v2245_v63  ;;  %v531_v0 = vpop.permute.xlu0 %530 }
 0x22f   :  { %1673 = vmatpush.xpose.msk.msrb.mxu1 %vm35_vm0, %v539_v59 }
 0x230   :  { %659 = vrot.lane.b32.xlu1 %v415_v62, %s1940_s4 }
 0x233   :  { %1674 = vmatpush.xpose.msk.msrb.mxu1 %vm35_vm0, %v537_v56 }
 0x234   :  { %v527_v6 = vpop.permute.xlu2 %526 }
 0x236   :  { %444 = vrot.lane.b32.xlu2 %v2057_v10, %s1941_s5  ;;  %518 = vrot.lane.b32.xlu0 %v389_v44, %s1940_s4  ;;  %v405_v10 = vmul.f32 %v343_v53, %v2252_v1 }
 0x237   :  { %1675 = vmatpush.xpose.msk.msrb.mxu1 %vm35_vm0, %v535_v36 }
 0x238   :  { %645 = vrot.lane.b32.xlu1 %v408_v60, %s1940_s4 }
 0x23b   :  { %1676 = vmatpush.xpose.msk.msrb.mxu1 %vm35_vm0, %v533_v47 }
 0x23e   :  { %438 = vrot.lane.b32.xlu2 %v2082_v24, %s1941_s5  ;;  %649 = vrot.lane.b32.xlu0 %v410_v58, %s1940_s4  ;;  %v404_v24 = vmul.f32 %v341_v49, %v2245_v63 }
 0x23f   :  { %1677 = vmatpush.xpose.msk.msrb.mxu1 %vm35_vm0, %v531_v0 }
 0x240   :  { %639 = vrot.lane.b32.xlu1 %v405_v10, %s1940_s4 }
 0x243   :  { %1678 = vmatpush.xpose.msk.msrb.mxu1 %vm35_vm0, %v529_v17 }
 0x246   :  { %432 = vrot.lane.b32.xlu2 %v2110_v52, %s1941_s5  ;;  %643 = vrot.lane.b32.xlu0 %v407_v4, %s1940_s4 }
 0x247   :  { %1679 = vmatpush.xpose.msk.msrb.mxu1 %vm35_vm0, %v527_v6 }
 0x248   :  { %448 = vrot.lane.b32.xlu1 %v2044_v3, %s1941_s5  ;;  %v658_v3 = vpop.permute.xlu2 %657 }
 0x24e   :  { %426 = vrot.lane.b32.xlu2 %v2153_v22, %s1941_s5  ;;  %637 = vrot.lane.b32.xlu0 %v404_v24, %s1940_s4 }
 0x250   :  { %442 = vrot.lane.b32.xlu1 %v2042_v2, %s1941_s5  ;;  %v666_v2 = vpop.permute.xlu1 %665 }
 0x256   :  { %420 = vrot.lane.b32.xlu2 %v2215_v42, %s1941_s5  ;;  %446 = vrot.lane.b32.xlu0 %v2065_v13, %s1941_s5 }
 0x258   :  { %436 = vrot.lane.b32.xlu1 %v2055_v9, %s1941_s5  ;;  %v523_v13 = vpop.permute.xlu1 %522 }
 0x25e   :  { %440 = vrot.lane.b32.xlu0 %v2086_v29, %s1941_s5  ;;  %v521_v29 = vpop.permute.xlu2 %520 }
 0x260   :  { %430 = vrot.lane.b32.xlu1 %v2080_v23, %s1941_s5  ;;  %v654_v52 = vpop.permute.xlu1 %653 }
 0x266   :  { %434 = vrot.lane.b32.xlu0 %v2112_v54, %s1941_s5 }
 0x268   :  { %424 = vrot.lane.b32.xlu1 %v2108_v51, %s1941_s5 }
 0x26e   :  { %428 = vrot.lane.b32.xlu0 %v2145_v15, %s1941_s5 }
 0x270   :  { %v652_v51 = vpop.permute.xlu2 %651 }
 0x276   :  { %422 = vrot.lane.b32.xlu0 %v2171_v37, %s1941_s5 }
 0x278   :  { %v648_v22 = vpop.permute.xlu2 %647 }
 0x280   :  { %v642_v27 = vpop.permute.xlu2 %641 }
 0x288   :  { %v668_v9 = vpop.permute.xlu0 %667  ;;  %v2373_v8 = vpop.permute.xlu2 %450 }
 0x289   :  { %1689 = vmatpush.xpose.msk.msra.mxu2 %vm35_vm0, %v668_v9  ;;  %v483_v18 = vmul.f32 %v2373_v8, %v2234_v61 }
 0x28d   :  { %1690 = vmatpush.xpose.msk.msra.mxu2 %vm35_vm0, %v666_v2 }
 0x290   :  { %v662_v23 = vpop.permute.xlu0 %661  ;;  %v2379_v16 = vpop.permute.xlu2 %444 }
 0x291   :  { %1691 = vmatpush.xpose.msk.msra.mxu2 %vm35_vm0, %v664_v48  ;;  %v480_v33 = vmul.f32 %v2379_v16, %v2208_v34 }
 0x295   :  { %1692 = vmatpush.xpose.msk.msra.mxu2 %vm35_vm0, %v662_v23 }
 0x298   :  { %v525_v54 = vpop.permute.xlu0 %524  ;;  %v439_v31 = vpop.permute.xlu2 %438 }
 0x299   :  { %1680 = vmatpush.xpose.msk.msrb.mxu1 %vm35_vm0, %v525_v54  ;;  %v477_v45 = vmul.f32 %v439_v31, %v2220_v46 }
 0x29a   :  { %v517_v15 = vpop.permute.xlu1 %516 }
 0x29d   :  { %1681 = vmatpush.xpose.msk.msrb.mxu1 %vm35_vm0, %v523_v13 }
 0x2a0   :  { %v656_v37 = vpop.permute.xlu0 %655  ;;  %v433_v36 = vpop.permute.xlu2 %432 }
 0x2a1   :  { %1682 = vmatpush.xpose.msk.msrb.mxu1 %vm35_vm0, %v521_v29  ;;  %v474_v59 = vmul.f32 %v433_v36, %v2226_v50  ;;  %v2415_v62 = vmul.f32 %v433_v36, %v2261_v5 }
 0x2a2   :  { %v660_v42 = vpop.permute.xlu1 %659 }
 0x2a3   :  { %1693 = vmatpush.xpose.msk.msra.mxu2 %vm35_vm0, %v660_v42 }
 0x2a7   :  { %1694 = vmatpush.xpose.msk.msra.mxu2 %vm35_vm0, %v658_v3 }
 0x2a8   :  { %v519_v55 = vpop.permute.xlu0 %518  ;;  %v2417_v47 = vpop.permute.xlu2 %426 }
 0x2a9   :  { %1683 = vmatpush.xpose.msk.msrb.mxu1 %vm35_vm0, %v519_v55  ;;  %v471_v10 = vmul.f32 %v2417_v47, %v2234_v61 }
 0x2aa   :  { %v646_v7 = vpop.permute.xlu1 %645 }
 0x2ab   :  { %1695 = vmatpush.xpose.msk.msra.mxu2 %vm35_vm0, %v656_v37 }
 0x2ad   :  { %1684 = vmatpush.xpose.msk.msrb.mxu1 %vm35_vm0, %v517_v15 }
 0x2af   :  { %1696 = vmatpush.xpose.msk.msra.mxu2 %vm35_vm0, %v654_v52 }
 0x2b0   :  { %1685 = vmatmul.msk.f32.vlgmr.msrb.gmra.mxu1 %vm35_vm0, %v2208_v34  ;;  %v650_v43 = vpop.permute.xlu0 %649 }
 0x2b2   :  { %v640_v11 = vpop.permute.xlu1 %639 }
 0x2b3   :  { %1697 = vmatpush.xpose.msk.msra.mxu2 %vm35_vm0, %v652_v51  ;;  %v493_v51 = vmul.f32 %v439_v31, %v2252_v1 }
 0x2b7   :  { %1698 = vmatpush.xpose.msk.msra.mxu2 %vm35_vm0, %v650_v43 }
 0x2b8   :  { %1686 = vmatmul.msk.f32.gmra.mxu1 %vm35_vm0, %v2220_v46  ;;  %v644_v12 = vpop.permute.xlu0 %643 }
 0x2ba   :  { %v2381_v39 = vpop.permute.xlu1 %448 }
 0x2bb   :  { %v482_v19 = vmul.f32 %v2381_v39, %v2226_v50  ;;  %1699 = vmatpush.xpose.msk.msra.mxu2 %vm35_vm0, %v648_v22  ;;  %v498_v42 = vmul.f32 %v2381_v39, %v2261_v5 }
 0x2bd   :  { %v1748_v21 = vpack.i.bf16 %v482_v19, %v483_v18 }
 0x2bf   :  { %1749 = vrot.lane.b32.xlu1 %v1748_v21, %s1941_s5  ;;  %1700 = vmatpush.xpose.msk.msra.mxu2 %vm35_vm0, %v646_v7 }
 0x2c0   :  { %v638_v25 = vpop.permute.xlu0 %637  ;;  %1687 = vmatmul.msk.f32.gmra.mxu1 %vm35_vm0, %v2226_v50 }
 0x2c2   :  { %v2392_v30 = vpop.permute.xlu1 %442 }
 0x2c3   :  { %1701 = vmatpush.xpose.msk.msra.mxu2 %vm35_vm0, %v644_v12  ;;  %v479_v26 = vmul.f32 %v2392_v30, %v2234_v61 }
 0x2c7   :  { %1702 = vmatpush.xpose.msk.msra.mxu2 %vm35_vm0, %v642_v27 }
 0x2c8   :  { %v447_v32 = vpop.permute.xlu0 %446  ;;  %1688 = vmatmul.msk.f32.gmra.mxu1 %vm35_vm0, %v2234_v61 }
 0x2c9   :  { %v481_v53 = vmul.f32 %v447_v32, %v2220_v46  ;;  %v497_v27 = vmul.f32 %v447_v32, %v2252_v1 }
 0x2ca   :  { %v437_v35 = vpop.permute.xlu1 %436 }
 0x2cb   :  { %v1753_v41 = vpack.i.bf16 %v480_v33, %v481_v53  ;;  %1703 = vmatpush.xpose.msk.msra.mxu2 %vm35_vm0, %v640_v11  ;;  %v476_v38 = vmul.f32 %v437_v35, %v2208_v34  ;;  %v495_v11 = vmul.f32 %v2392_v30, %v2278_v28 }
 0x2cd   :  { %1754 = vrot.lane.b32.xlu0 %v1753_v41, %s1941_s5  ;;  %v1763_v49 = vpack.i.bf16 %v476_v38, %v477_v45 }
 0x2cf   :  { %1704 = vmatpush.xpose.msk.msra.mxu2 %vm35_vm0, %v638_v25 }
 0x2d0   :  { %v441_v40 = vpop.permute.xlu0 %440 }
 0x2d1   :  { %v478_v17 = vmul.f32 %v441_v40, %v2226_v50  ;;  %v494_v43 = vmul.f32 %v441_v40, %v2261_v5 }
 0x2d2   :  { %v431_v56 = vpop.permute.xlu1 %430  ;;  %1705 = vmatmul.msk.f32.vlgmr.msra.gmra.mxu2 %vm35_vm0, %v2245_v63 }
 0x2d3   :  { %v1758_v14 = vpack.i.bf16 %v478_v17, %v479_v26  ;;  %v473_v2 = vmul.f32 %v431_v56, %v2220_v46  ;;  %v489_v3 = vmul.f32 %v431_v56, %v2252_v1  ;;  %v1803_v12 = vpack.i.bf16 %v494_v43, %v495_v11 }
 0x2d5   :  { %1764 = vrot.lane.b32.xlu0 %v1763_v49, %s1941_s5  ;;  %1759 = vrot.lane.b32.xlu1 %v1758_v14, %s1941_s5 }
 0x2d8   :  { %v435_v57 = vpop.permute.xlu0 %434 }
 0x2d9   :  { %v2420_v44 = vmul.f32 %v435_v57, %v2278_v28  ;;  %v475_v60 = vmul.f32 %v435_v57, %v2234_v61  ;;  %v492_v61 = vmul.f32 %v437_v35, %v2245_v63 }
 0x2da   :  { %v2425_v0 = vpop.permute.xlu1 %424  ;;  %1706 = vmatmul.msk.f32.gmra.mxu2 %vm35_vm0, %v2252_v1 }
 0x2db   :  { %v1808_v48 = vpack.i.bf16 %v2415_v62, %v2420_v44  ;;  %v1768_v58 = vpack.i.bf16 %v474_v59, %v475_v60  ;;  %v470_v4 = vmul.f32 %v2425_v0, %v2226_v50  ;;  %v2442_v50 = vpop.permute.xlu2 %420  ;;  %v1793_v22 = vpack.i.bf16 %v492_v61, %v493_v51 }
 0x2dc   :  { %v468_v54 = vmul.f32 %v2442_v50, %v2208_v34  ;;  %v486_v62 = vmul.f32 %v2425_v0, %v2261_v5 }
 0x2dd   :  { %1769 = vrot.lane.b32.xlu0 %v1768_v58, %s1941_s5  ;;  %v1778_v6 = vpack.i.bf16 %v470_v4, %v471_v10 }
 0x2df   :  { %1779 = vrot.lane.b32.xlu2 %v1778_v6, %s1941_s5 }
 0x2e0   :  { %v429_v24 = vpop.permute.xlu0 %428 }
 0x2e1   :  { %v488_v9 = vmul.f32 %v429_v24, %v2245_v63  ;;  %v472_v13 = vmul.f32 %v429_v24, %v2208_v34  ;;  %v499_v34 = vmul.f32 %v2373_v8, %v2278_v28 }
 0x2e2   :  { %1707 = vmatmul.msk.f32.gmra.mxu2 %vm35_vm0, %v2261_v5 }
 0x2e3   :  { %v1813_v29 = vpack.i.bf16 %v488_v9, %v489_v3  ;;  %v1773_v23 = vpack.i.bf16 %v472_v13, %v473_v2  ;;  %v1798_v55 = vpack.i.bf16 %v498_v42, %v499_v34 }
 0x2e5   :  { %1774 = vrot.lane.b32.xlu0 %v1773_v23, %s1941_s5 }
 0x2e8   :  { %v2445_v52 = vpop.permute.xlu0 %422 }
 0x2e9   :  { %v469_v15 = vmul.f32 %v2445_v52, %v2220_v46  ;;  %v496_v46 = vmul.f32 %v2379_v16, %v2245_v63 }
 0x2ea   :  { %1708 = vmatmul.msk.f32.gmra.mxu2 %vm35_vm0, %v2278_v28 }
 0x2eb   :  { %v1783_v37 = vpack.i.bf16 %v468_v54, %v469_v15  ;;  %v1788_v7 = vpack.i.bf16 %v496_v46, %v497_v27 }
 0x2ed   :  { %1794 = vrot.lane.b32.xlu0 %v1793_v22, %s1941_s5  ;;  %1784 = vrot.lane.b32.xlu1 %v1783_v37, %s1941_s5 }
 0x2f5   :  { %1799 = vrot.lane.b32.xlu0 %v1798_v55, %s1941_s5  ;;  %1789 = vrot.lane.b32.xlu1 %v1788_v7, %s1941_s5 }
 0x2fd   :  { %1804 = vrot.lane.b32.xlu0 %v1803_v12, %s1941_s5 }
 0x32d   :  { %v2469_v39 = vpop.f32.mrf.mxu1 }
 0x32e   :  { %742 = vmax.xlane.f32.xlu2 %v2469_v39 }
 0x331   :  { %v1750_v8 = vpop.permute.xlu1 %1749 }
 0x332   :  { %v1751_v16 = vunpack.i.l.bf16 %v1750_v8  ;;  %v1752_v19 = vunpack.i.h.bf16 %v1750_v8 }
 0x334   :  { %846 = vmatpush.msra.mxu3 %v1751_v16 }
 0x335   :  { %v2472_v18 = vpop.f32.mrf.mxu1 }
 0x336   :  { %744 = vmax.xlane.f32.xlu1 %v2472_v18  ;;  %847 = vmatpush.msra.mxu3 %v1752_v19 }
 0x339   :  { %v1780_v56 = vpop.permute.xlu2 %1779 }
 0x33a   :  { %v1781_v59 = vunpack.i.l.bf16 %v1780_v56  ;;  %v1782_v58 = vunpack.i.h.bf16 %v1780_v56 }
 0x33d   :  { %v2475_v21 = vpop.f32.mrf.mxu1 }
 0x33e   :  { %746 = vmax.xlane.f32.xlu0 %v2475_v21 }
 0x33f   :  { %v1755_v25 = vpop.permute.xlu0 %1754 }
 0x340   :  { %v1756_v30 = vunpack.i.l.bf16 %v1755_v25  ;;  %v1757_v31 = vunpack.i.h.bf16 %v1755_v25 }
 0x342   :  { %848 = vmatpush.msra.mxu3 %v1756_v30 }
 0x344   :  { %849 = vmatpush.msra.mxu3 %v1757_v31 }
 0x345   :  { %v2478_v32 = vpop.f32.mrf.mxu1 }
 0x346   :  { %748 = vmax.xlane.f32.xlu2 %v2478_v32 }
 0x347   :  { %v1760_v33 = vpop.permute.xlu1 %1759  ;;  %v1765_v53 = vpop.permute.xlu0 %1764 }
 0x348   :  { %v1761_v41 = vunpack.i.l.bf16 %v1760_v33  ;;  %v1762_v35 = vunpack.i.h.bf16 %v1760_v33  ;;  %v1766_v36 = vunpack.i.l.bf16 %v1765_v53  ;;  %v1767_v38 = vunpack.i.h.bf16 %v1765_v53 }
 0x34a   :  { %850 = vmatpush.msra.mxu3 %v1761_v41 }
 0x34c   :  { %851 = vmatpush.msra.mxu3 %v1762_v35 }
 0x34e   :  { %852 = vmatpush.msra.mxu3 %v1766_v36 }
 0x34f   :  { %1814 = vrot.lane.b32.xlu1 %v1813_v29, %s1941_s5  ;;  %v1770_v40 = vpop.permute.xlu0 %1769 }
 0x350   :  { %853 = vmatpush.msra.mxu3 %v1767_v38  ;;  %v1771_v45 = vunpack.i.l.bf16 %v1770_v40  ;;  %v1772_v26 = vunpack.i.h.bf16 %v1770_v40 }
 0x352   :  { %854 = vmatpush.msra.mxu3 %v1771_v45 }
 0x354   :  { %855 = vmatpush.msra.mxu3 %v1772_v26 }
 0x355   :  { %v2482_v17 = vpop.f32.mrf.mxu2 }
 0x357   :  { %v1775_v49 = vpop.permute.xlu0 %1774 }
 0x358   :  { %v1776_v14 = vunpack.i.l.bf16 %v1775_v49  ;;  %v1777_v57 = vunpack.i.h.bf16 %v1775_v49 }
 0x35a   :  { %856 = vmatpush.msra.mxu3 %v1776_v14 }
 0x35c   :  { %857 = vmatpush.msra.mxu3 %v1777_v57 }
 0x35d   :  { %v2484_v60 = vpop.f32.mrf.mxu2 }
 0x35e   :  { %858 = vmatpush.msra.mxu3 %v1781_v59  ;;  %1809 = vrot.lane.b32.xlu2 %v1808_v48, %s1941_s5  ;;  %v487_v48 = vmul.f32 %v2417_v47, %v2278_v28  ;;  %v485_v28 = vmul.f32 %v2445_v52, %v2252_v1  ;;  %v484_v47 = vmul.f32 %v2442_v50, %v2245_v63 }
 0x35f   :  { %752 = vmax.xlane.f32.xlu0 %v2484_v60  ;;  %v1785_v10 = vpop.permute.xlu1 %1784  ;;  %v1795_v4 = vpop.permute.xlu0 %1794 }
 0x360   :  { %859 = vmatpush.msra.mxu3 %v1782_v58  ;;  %v1786_v6 = vunpack.i.l.bf16 %v1785_v10  ;;  %v1787_v24 = vunpack.i.h.bf16 %v1785_v10  ;;  %v1818_v51 = vpack.i.bf16 %v486_v62, %v487_v48  ;;  %v1796_v15 = vunpack.i.l.bf16 %v1795_v4 }
 0x361   :  { %v1797_v22 = vunpack.i.h.bf16 %v1795_v4  ;;  %v1823_v0 = vpack.i.bf16 %v484_v47, %v485_v28  ;;  %v1131_v4 = vld [vmem:[#allocation2 + $0x30] sm:$0xff] }
 0x362   :  { %860 = vmatpush.msra.mxu3 %v1786_v6  ;;  %v1130_v6 = vld [vmem:[#allocation2 + $0x28] sm:$0xff] }
 0x364   :  { %861 = vmatpush.msra.mxu3 %v1787_v24  ;;  %v1129_v24 = vld [vmem:[#allocation2 + $0x20] sm:$0xff] }
 0x365   :  { %v2497_v5 = vpop.f32.mrf.mxu2 }
 0x367   :  { %v1800_v2 = vpop.permute.xlu0 %1799  ;;  %v1790_v9 = vpop.permute.xlu1 %1789 }
 0x368   :  { %v1801_v3 = vunpack.i.l.bf16 %v1800_v2  ;;  %v1802_v13 = vunpack.i.h.bf16 %v1800_v2  ;;  %v1791_v29 = vunpack.i.l.bf16 %v1790_v9  ;;  %v1792_v44 = vunpack.i.h.bf16 %v1790_v9 }
 0x36a   :  { %939 = vmatpush.msrb.mxu3 %v1801_v3 }
 0x36c   :  { %940 = vmatpush.msrb.mxu3 %v1802_v13 }
 0x36d   :  { %v2508_v11 = vpop.f32.mrf.mxu2 }
 0x36e   :  { %941 = vmatpush.msrb.mxu3 %v1791_v29 }
 0x36f   :  { %v1805_v23 = vpop.permute.xlu0 %1804 }
 0x370   :  { %942 = vmatpush.msrb.mxu3 %v1792_v44  ;;  %v1806_v61 = vunpack.i.l.bf16 %v1805_v23  ;;  %v1807_v54 = vunpack.i.h.bf16 %v1805_v23 }
 0x372   :  { %943 = vmatpush.msrb.mxu3 %v1806_v61 }
 0x373   :  { %1819 = vrot.lane.b32.xlu0 %v1818_v51, %s1941_s5 }
 0x374   :  { %944 = vmatpush.msrb.mxu3 %v1807_v54 }
 0x376   :  { %945 = vmatpush.msrb.mxu3 %v1796_v15 }
 0x378   :  { %946 = vmatpush.msrb.mxu3 %v1797_v22 }
 0x379   :  { %750 = vmax.xlane.f32.xlu1 %v2482_v17 }
 0x387   :  { %754 = vmax.xlane.f32.xlu2 %v2497_v5 }
 0x392   :  { %1824 = vrot.lane.b32.xlu1 %v1823_v0, %s1941_s5 }
 0x3a1   :  { %v743_v37 = vpop.xlane.xlu2 %742 }
 0x3a2   :  { %v758_v42 = vsub.f32 %v2469_v39, %v743_v37 }
 0x3a4   :  { %v766_v27 = vmul.f32 1.442695, %v758_v42 }
 0x3a6   :  { %1853 = vpow2.f32 %v766_v27 }
 0x3a9   :  { %v745_v34 = vpop.xlane.xlu1 %744 }
 0x3aa   :  { %v759_v46 = vsub.f32 %v2472_v18, %v745_v34 }
 0x3ac   :  { %v1854_v55 = vpop.eup %1853  ;;  %v768_v7 = vmul.f32 1.442695, %v759_v46 }
 0x3ad   :  { %862 = vmatmul.f32.vlgmr.msra.gmra.mxu3 %v1854_v55  ;;  %984 = vmatmul.f32.vlgmr.msra.gmra.mxu0 %v1854_v55 }
 0x3ae   :  { %1855 = vpow2.f32 %v768_v7 }
 0x3b1   :  { %v747_v1 = vpop.xlane.xlu0 %746 }
 0x3b2   :  { %v760_v52 = vsub.f32 %v2475_v21, %v747_v1 }
 0x3b4   :  { %v1856_v63 = vpop.eup %1855  ;;  %v770_v50 = vmul.f32 1.442695, %v760_v52 }
 0x3b5   :  { %865 = vmatmul.f32.gmra.mxu3 %v1856_v63  ;;  %987 = vmatmul.f32.gmra.mxu0 %v1856_v63 }
 0x3b6   :  { %1857 = vpow2.f32 %v770_v50 }
 0x3b9   :  { %v749_v43 = vpop.xlane.xlu2 %748 }
 0x3ba   :  { %v761_v12 = vsub.f32 %v2478_v32, %v749_v43 }
 0x3bc   :  { %756 = vmax.xlane.f32.xlu1 %v2508_v11  ;;  %v1858_v39 = vpop.eup %1857  ;;  %v772_v8 = vmul.f32 1.442695, %v761_v12 }
 0x3bd   :  { %868 = vmatmul.f32.gmra.mxu3 %v1858_v39  ;;  %990 = vmatmul.f32.gmra.mxu0 %v1858_v39 }
 0x3be   :  { %1859 = vpow2.f32 %v772_v8 }
 0x3c1   :  { %v1810_v16 = vpop.permute.xlu2 %1809  ;;  %v1815_v19 = vpop.permute.xlu1 %1814 }
 0x3c2   :  { %v1811_v18 = vunpack.i.l.bf16 %v1810_v16  ;;  %v1812_v25 = vunpack.i.h.bf16 %v1810_v16  ;;  %v1816_v30 = vunpack.i.l.bf16 %v1815_v19  ;;  %v1817_v31 = vunpack.i.h.bf16 %v1815_v19 }
 0x3c4   :  { %v1860_v21 = vpop.eup %1859  ;;  %947 = vmatpush.msrb.mxu3 %v1811_v18 }
 0x3c5   :  { %871 = vmatmul.f32.gmra.mxu3 %v1860_v21  ;;  %993 = vmatmul.f32.gmra.mxu0 %v1860_v21 }
 0x3c6   :  { %948 = vmatpush.msrb.mxu3 %v1812_v25 }
 0x3c8   :  { %949 = vmatpush.msrb.mxu3 %v1816_v30 }
 0x3ca   :  { %950 = vmatpush.msrb.mxu3 %v1817_v31 }
 0x3d2   :  { %v753_v32 = vpop.xlane.xlu0 %752 }
 0x3d3   :  { %v763_v40 = vsub.f32 %v2484_v60, %v753_v32  ;;  %v1132_v60 = vld [vmem:[#allocation2 + $0x38] sm:$0xff] }
 0x3d4   :  { %1169 = vmatpush.msra.mxu1 %v1132_v60 }
 0x3d5   :  { %v776_v45 = vmul.f32 1.442695, %v763_v40 }
 0x3d6   :  { %1170 = vmatpush.msra.mxu1 %v1131_v4 }
 0x3d8   :  { %1171 = vmatpush.msra.mxu1 %v1130_v6 }
 0x3da   :  { %1172 = vmatpush.msra.mxu1 %v1129_v24 }
 0x3e5   :  { %v1820_v33 = vpop.permute.xlu0 %1819 }
 0x3e6   :  { %v1821_v53 = vunpack.i.l.bf16 %v1820_v33  ;;  %v1822_v41 = vunpack.i.h.bf16 %v1820_v33 }
 0x3e8   :  { %951 = vmatpush.msrb.mxu3 %v1821_v53 }
 0x3ea   :  { %952 = vmatpush.msrb.mxu3 %v1822_v41 }
 0x3ec   :  { %v751_v35 = vpop.xlane.xlu1 %750 }
 0x3ed   :  { %v762_v36 = vsub.f32 %v2482_v17, %v751_v35 }
 0x3ef   :  { %v774_v38 = vmul.f32 1.442695, %v762_v36 }
 0x3f1   :  { %1861 = vpow2.f32 %v774_v38 }
 0x3f2   :  { %1863 = vpow2.f32 %v776_v45 }
 0x3f7   :  { %v1862_v26 = vpop.eup %1861 }
 0x3f8   :  { %996 = vmatmul.f32.gmra.mxu0 %v1862_v26  ;;  %v1864_v57 = vpop.eup %1863 }
 0x3fa   :  { %v755_v49 = vpop.xlane.xlu2 %754 }
 0x3fb   :  { %v764_v14 = vsub.f32 %v2497_v5, %v755_v49 }
 0x3fd   :  { %v778_v56 = vmul.f32 1.442695, %v764_v14 }
 0x3ff   :  { %1865 = vpow2.f32 %v778_v56 }
 0x400   :  { %999 = vmatmul.f32.gmra.mxu0 %v1864_v57 }
 0x404   :  { %v1825_v59 = vpop.permute.xlu1 %1824 }
 0x405   :  { %v1826_v58 = vunpack.i.l.bf16 %v1825_v59  ;;  %v1866_v10 = vpop.eup %1865  ;;  %v1827_v17 = vunpack.i.h.bf16 %v1825_v59 }
 0x407   :  { %953 = vmatpush.msrb.mxu3 %v1826_v58 }
 0x408   :  { %1002 = vmatmul.f32.gmra.mxu0 %v1866_v10 }
 0x409   :  { %954 = vmatpush.msrb.mxu3 %v1827_v17 }
 0x40a   :  { %955 = vmatmul.f32.vlgmr.msrb.gmra.mxu3 %v1862_v26 }
 0x412   :  { %958 = vmatmul.f32.gmra.mxu3 %v1864_v57 }
 0x41a   :  { %961 = vmatmul.f32.gmra.mxu3 %v1866_v10 }
 0x42a   :  { %v985_v2 = vpop.f32.mrf.mxu0 }
 0x42b   :  { %1867 = vrcp.f32 %v985_v2  ;;  %v1020_v23 = vand.u32 2147483648, %v985_v2  ;;  %v1018_v54 = vand.u32 2147483647, %v985_v2  ;;  %vm1014_vm12 = vweird.f32 %v985_v2 }
 0x42d   :  { %v1021_v5 = vor.u32 1.1754944e-38, %v1020_v23  ;;  %vm1019_vm14 = vcmp.eq.f32.partialorder %v1018_v54, 8.507059e+37 }
 0x42f   :  { %v757_v3 = vpop.xlane.xlu1 %756 }
 0x430   :  { %v765_v9 = vsub.f32 %v2508_v11, %v757_v3  ;;  %v863_v61 = vpop.f32.mrf.mxu3 }
 0x431   :  { %v1868_v13 = vpop.eup %1867 }
 0x432   :  { %v1010_v29 = vmul.f32 %v1868_v13, %v985_v2  ;;  %v780_v62 = vmul.f32 1.442695, %v765_v9  ;;  %v988_v44 = vpop.f32.mrf.mxu0  ;;  %vm1015_vm11 = vweird.f32 %v1868_v13 }
 0x433   :  { %1869 = vrcp.f32 %v988_v44  ;;  %vm1016_vm13 = vmor %vm1014_vm12, %vm1015_vm11  ;;  %v1034_v46 = vand.u32 2147483648, %v988_v44  ;;  %v1032_v7 = vand.u32 2147483647, %v988_v44  ;;  %vm1028_vm1 = vweird.f32 %v988_v44 }
 0x434   :  { %v1011_v48 = vsub.f32 1.0, %v1010_v29  ;;  %1871 = vpow2.f32 %v780_v62 }
 0x435   :  { %v1035_v63 = vor.u32 1.1754944e-38, %v1034_v46  ;;  %vm1033_vm3 = vcmp.eq.f32.partialorder %v1032_v7, 8.507059e+37 }
 0x436   :  { %v1012_v51 = vmul.f32 %v1868_v13, %v1011_v48 }
 0x438   :  { %v1013_v15 = vadd.f32 %v1868_v13, %v1012_v51  ;;  %v866_v1 = vpop.f32.mrf.mxu3 }
 0x439   :  { %v1870_v22 = vpop.eup %1869 }
 0x43a   :  { %v1872_v28 = vpop.eup %1871  ;;  %v1017_v47 = vsel %vm1016_vm13, %v1868_v13, %v1013_v15  ;;  %v1024_v0 = vmul.f32 %v1870_v22, %v988_v44  ;;  %v991_v42 = vpop.f32.mrf.mxu0  ;;  %vm1029_vm15 = vweird.f32 %v1870_v22 }
 0x43b   :  { %v1022_v37 = vsel %vm1019_vm14, %v1021_v5, %v1017_v47  ;;  %964 = vmatmul.f32.gmra.mxu3 %v1872_v28  ;;  %1005 = vmatmul.f32.gmra.mxu0 %v1872_v28  ;;  %1873 = vrcp.f32 %v991_v42  ;;  %vm1030_vm2 = vmor %vm1028_vm1, %vm1029_vm15  ;;  %v1048_v18 = vand.u32 2147483648, %v991_v42  ;;  %v1046_v21 = vand.u32 2147483647, %v991_v42 }
 0x43c   :  { %v1121_v27 = vmul.f32 %v1022_v37, %v863_v61  ;;  %v1025_v34 = vsub.f32 1.0, %v1024_v0  ;;  %vm1042_vm5 = vweird.f32 %v991_v42 }
 0x43d   :  { %v1049_v32 = vor.u32 1.1754944e-38, %v1048_v18  ;;  %vm1047_vm7 = vcmp.eq.f32.partialorder %v1046_v21, 8.507059e+37 }
 0x43e   :  { %v1026_v55 = vmul.f32 %v1870_v22, %v1025_v34  ;;  %1709 = vmatmul.msk.f32.vlgmr.msra.gmra.mxu1 %vm35_vm0, %v1121_v27 }
 0x440   :  { %v1027_v52 = vadd.f32 %v1870_v22, %v1026_v55  ;;  %v869_v31 = vpop.f32.mrf.mxu3 }
 0x441   :  { %v1874_v50 = vpop.eup %1873 }
 0x442   :  { %v1031_v43 = vsel %vm1030_vm2, %v1870_v22, %v1027_v52  ;;  %v1038_v12 = vmul.f32 %v1874_v50, %v991_v42  ;;  %v994_v39 = vpop.f32.mrf.mxu0  ;;  %vm1043_vm4 = vweird.f32 %v1874_v50 }
 0x443   :  { %v1036_v11 = vsel %vm1033_vm3, %v1035_v63, %v1031_v43  ;;  %1875 = vrcp.f32 %v994_v39  ;;  %vm1044_vm6 = vmor %vm1042_vm5, %vm1043_vm4  ;;  %v1062_v38 = vand.u32 2147483648, %v994_v39  ;;  %v1060_v45 = vand.u32 2147483647, %v994_v39 }
 0x444   :  { %v1122_v8 = vmul.f32 %v1036_v11, %v866_v1  ;;  %v1039_v16 = vsub.f32 1.0, %v1038_v12  ;;  %vm1056_vm9 = vweird.f32 %v994_v39 }
 0x445   :  { %v1063_v49 = vor.u32 1.1754944e-38, %v1062_v38  ;;  %vm1061_vm11 = vcmp.eq.f32.partialorder %v1060_v45, 8.507059e+37 }
 0x446   :  { %1710 = vmatmul.msk.f32.gmra.mxu1 %vm35_vm0, %v1122_v8  ;;  %v1040_v19 = vmul.f32 %v1874_v50, %v1039_v16  ;;  %v1901_v16 = vld [vmem:[%s2746_s0] sm:$0xff] }
 0x448   :  { %v1041_v25 = vadd.f32 %v1874_v50, %v1040_v19  ;;  %v872_v56 = vpop.f32.mrf.mxu3 }
 0x449   :  { %v1876_v30 = vpop.eup %1875 }
 0x44a   :  { %v1045_v33 = vsel %vm1044_vm6, %v1874_v50, %v1041_v25  ;;  %v1052_v53 = vmul.f32 %v1876_v30, %v994_v39  ;;  %vm1057_vm8 = vweird.f32 %v1876_v30 }
 0x44b   :  { %v1050_v41 = vsel %vm1047_vm7, %v1049_v32, %v1045_v33  ;;  %vm1058_vm10 = vmor %vm1056_vm9, %vm1057_vm8 }
 0x44c   :  { %v1123_v35 = vmul.f32 %v1050_v41, %v869_v31  ;;  %v1053_v36 = vsub.f32 1.0, %v1052_v53  ;;  %v1902_v41 = vld [vmem:[%s2746_s0 + $0x8] sm:$0xff] }
 0x44e   :  { %v1054_v40 = vmul.f32 %v1876_v30, %v1053_v36  ;;  %1711 = vmatmul.msk.f32.gmra.mxu1 %vm35_vm0, %v1123_v35 }
 0x450   :  { %v1055_v26 = vadd.f32 %v1876_v30, %v1054_v40 }
 0x452   :  { %v1059_v14 = vsel %vm1058_vm10, %v1876_v30, %v1055_v26 }
 0x453   :  { %v1064_v57 = vsel %vm1061_vm11, %v1063_v49, %v1059_v14 }
 0x454   :  { %v1124_v59 = vmul.f32 %v1064_v57, %v872_v56  ;;  %v1903_v57 = vld [vmem:[%s2746_s0 + $0x10] sm:$0xff] }
 0x456   :  { %1712 = vmatmul.msk.f32.gmra.mxu1 %vm35_vm0, %v1124_v59 }
 0x475   :  { %v997_v58 = vpop.f32.mrf.mxu0 }
 0x476   :  { %1877 = vrcp.f32 %v997_v58  ;;  %v1076_v29 = vand.u32 2147483648, %v997_v58  ;;  %vm1070_vm13 = vweird.f32 %v997_v58  ;;  %v1074_v62 = vand.u32 2147483647, %v997_v58 }
 0x478   :  { %v1077_v23 = vor.u32 1.1754944e-38, %v1076_v29  ;;  %vm1075_vm15 = vcmp.eq.f32.partialorder %v1074_v62, 8.507059e+37 }
 0x47c   :  { %v1878_v10 = vpop.eup %1877 }
 0x47d   :  { %v1066_v17 = vmul.f32 %v1878_v10, %v997_v58  ;;  %v1000_v60 = vpop.f32.mrf.mxu0  ;;  %vm1071_vm12 = vweird.f32 %v1878_v10 }
 0x47e   :  { %1879 = vrcp.f32 %v1000_v60  ;;  %vm1072_vm14 = vmor %vm1070_vm13, %vm1071_vm12  ;;  %v1090_v47 = vand.u32 2147483648, %v1000_v60  ;;  %vm1084_vm2 = vweird.f32 %v1000_v60  ;;  %v1088_v0 = vand.u32 2147483647, %v1000_v60 }
 0x47f   :  { %v1067_v4 = vsub.f32 1.0, %v1066_v17  ;;  %v1904_v17 = vld [vmem:[%s2746_s0 + $0x18] sm:$0xff] }
 0x480   :  { %v1091_v27 = vor.u32 1.1754944e-38, %v1090_v47  ;;  %vm1089_vm4 = vcmp.eq.f32.partialorder %v1088_v0, 8.507059e+37 }
 0x481   :  { %v1068_v6 = vmul.f32 %v1878_v10, %v1067_v4 }
 0x483   :  { %v1069_v9 = vadd.f32 %v1878_v10, %v1068_v6 }
 0x484   :  { %v1880_v24 = vpop.eup %1879 }
 0x485   :  { %v1080_v2 = vmul.f32 %v1880_v24, %v1000_v60  ;;  %v1003_v3 = vpop.f32.mrf.mxu0  ;;  %v1073_v44 = vsel %vm1072_vm14, %v1878_v10, %v1069_v9  ;;  %vm1085_vm1 = vweird.f32 %v1880_v24 }
 0x486   :  { %1881 = vrcp.f32 %v1003_v3  ;;  %v1078_v15 = vsel %vm1075_vm15, %v1077_v23, %v1073_v44  ;;  %vm1086_vm3 = vmor %vm1084_vm2, %vm1085_vm1  ;;  %v1104_v1 = vand.u32 2147483648, %v1003_v3  ;;  %vm1098_vm6 = vweird.f32 %v1003_v3 }
 0x487   :  { %v1081_v13 = vsub.f32 1.0, %v1080_v2  ;;  %v1102_v52 = vand.u32 2147483647, %v1003_v3 }
 0x488   :  { %v1105_v50 = vor.u32 1.1754944e-38, %v1104_v1  ;;  %v1908_v1 = vld [vmem:[%s2746_s0 + $0x38] sm:$0xff] }
 0x489   :  { %v1082_v48 = vmul.f32 %v1880_v24, %v1081_v13  ;;  %vm1103_vm8 = vcmp.eq.f32.partialorder %v1102_v52, 8.507059e+37  ;;  %v1906_v13 = vld [vmem:[%s2746_s0 + $0x28] sm:$0xff] }
 0x48b   :  { %v1083_v5 = vadd.f32 %v1880_v24, %v1082_v48  ;;  %v1907_v48 = vld [vmem:[%s2746_s0 + $0x30] sm:$0xff] }
 0x48c   :  { %v1882_v61 = vpop.eup %1881 }
 0x48d   :  { %v1094_v51 = vmul.f32 %v1882_v61, %v1003_v3  ;;  %v956_v54 = vpop.f32.mrf.mxu3  ;;  %v1087_v37 = vsel %vm1086_vm3, %v1880_v24, %v1083_v5  ;;  %vm1099_vm5 = vweird.f32 %v1882_v61  ;;  %v1905_v24 = vld [vmem:[%s2746_s0 + $0x20] sm:$0xff] }
 0x48e   :  { %v1125_v22 = vmul.f32 %v1078_v15, %v956_v54  ;;  %v1092_v46 = vsel %vm1089_vm4, %v1091_v27, %v1087_v37  ;;  %vm1100_vm7 = vmor %vm1098_vm6, %vm1099_vm5 }
 0x48f   :  { %v1095_v28 = vsub.f32 1.0, %v1094_v51 }
 0x490   :  { %1713 = vmatmul.msk.f32.gmra.mxu1 %vm35_vm0, %v1125_v22 }
 0x491   :  { %v1096_v42 = vmul.f32 %v1882_v61, %v1095_v28 }
 0x493   :  { %v1097_v7 = vadd.f32 %v1882_v61, %v1096_v42 }
 0x495   :  { %v959_v34 = vpop.f32.mrf.mxu3  ;;  %v1101_v63 = vsel %vm1100_vm7, %v1882_v61, %v1097_v7 }
 0x496   :  { %v1126_v55 = vmul.f32 %v1092_v46, %v959_v34  ;;  %v1106_v11 = vsel %vm1103_vm8, %v1105_v50, %v1101_v63 }
 0x498   :  { %1714 = vmatmul.msk.f32.gmra.mxu1 %vm35_vm0, %v1126_v55 }
 0x49d   :  { %v962_v43 = vpop.f32.mrf.mxu3 }
 0x49e   :  { %v1127_v12 = vmul.f32 %v1106_v11, %v962_v43 }
 0x4a0   :  { %1715 = vmatmul.msk.f32.gmra.mxu1 %vm35_vm0, %v1127_v12 }
 0x4b8   :  { %v1006_v39 = vpop.f32.mrf.mxu0 }
 0x4b9   :  { %1883 = vrcp.f32 %v1006_v39  ;;  %v1118_v31 = vand.u32 2147483648, %v1006_v39  ;;  %v1116_v53 = vand.u32 2147483647, %v1006_v39  ;;  %vm1112_vm10 = vweird.f32 %v1006_v39 }
 0x4bb   :  { %v1174_v8 = vpop.f32.mrf.mxu1  ;;  %v1119_v40 = vor.u32 1.1754944e-38, %v1118_v31  ;;  %vm1117_vm12 = vcmp.eq.f32.partialorder %v1116_v53, 8.507059e+37 }
 0x4bc   :  { %v2526_v18 = vadd.f32 %v1901_v16, %v1174_v8 }
 0x4be   :  { %v1206_v19 = vsel %vm35_vm0, %v2526_v18, 0.0  ;;  %v965_v26 = vpop.f32.mrf.mxu3 }
 0x4bf   :  { %v1884_v21 = vpop.eup %1883  ;;  %1207 = vadd.xlane.f32.xlu0 %v1206_v19 }
 0x4c0   :  { %v1108_v25 = vmul.f32 %v1884_v21, %v1006_v39  ;;  %vm1113_vm9 = vweird.f32 %v1884_v21 }
 0x4c1   :  { %vm1114_vm11 = vmor %vm1112_vm10, %vm1113_vm9 }
 0x4c2   :  { %v1109_v30 = vsub.f32 1.0, %v1108_v25 }
 0x4c3   :  { %v1177_v32 = vpop.f32.mrf.mxu1 }
 0x4c4   :  { %v1110_v33 = vmul.f32 %v1884_v21, %v1109_v30  ;;  %v2533_v35 = vadd.f32 %v1902_v41, %v1177_v32 }
 0x4c6   :  { %v1111_v36 = vadd.f32 %v1884_v21, %v1110_v33  ;;  %v1209_v38 = vsel %vm35_vm0, %v2533_v35, 0.0 }
 0x4c7   :  { %1210 = vadd.xlane.f32.xlu2 %v1209_v38 }
 0x4c8   :  { %v1115_v45 = vsel %vm1114_vm11, %v1884_v21, %v1111_v36 }
 0x4c9   :  { %v1120_v49 = vsel %vm1117_vm12, %v1119_v40, %v1115_v45 }
 0x4ca   :  { %v1128_v14 = vmul.f32 %v1120_v49, %v965_v26  ;;  %v1405_v49 = vld [vmem:[#allocation2 + $0x58] sm:$0xff] }
 0x4cb   :  { %v1180_v56 = vpop.f32.mrf.mxu1  ;;  %1444 = vmatpush.msrb.mxu2 %v1405_v49 }
 0x4cc   :  { %1716 = vmatmul.msk.f32.gmra.mxu1 %vm35_vm0, %v1128_v14  ;;  %v2541_v59 = vadd.f32 %v1903_v57, %v1180_v56  ;;  %v1404_v14 = vld [vmem:[#allocation2 + $0x50] sm:$0xff]  ;;  %v1403_v56 = vld [vmem:[#allocation2 + $0x48] sm:$0xff]  ;;  %v1402_v57 = vld [vmem:[#allocation2 + $0x40] sm:$0xff] }
 0x4cd   :  { %1445 = vmatpush.msrb.mxu2 %v1404_v14 }
 0x4ce   :  { %v1212_v58 = vsel %vm35_vm0, %v2541_v59, 0.0 }
 0x4cf   :  { %1213 = vadd.xlane.f32.xlu2 %v1212_v58  ;;  %1446 = vmatpush.msrb.mxu2 %v1403_v56 }
 0x4d1   :  { %1447 = vmatpush.msrb.mxu2 %v1402_v57 }
 0x4d3   :  { %v1183_v10 = vpop.f32.mrf.mxu1 }
 0x4d4   :  { %v2548_v60 = vadd.f32 %v1904_v17, %v1183_v10 }
 0x4d6   :  { %v1215_v4 = vsel %vm35_vm0, %v2548_v60, 0.0 }
 0x4d7   :  { %1216 = vadd.xlane.f32.xlu2 %v1215_v4 }
 0x50d   :  { %v1186_v6 = vpop.f32.mrf.mxu1 }
 0x50e   :  { %v2555_v2 = vadd.f32 %v1905_v24, %v1186_v6 }
 0x510   :  { %v1218_v3 = vsel %vm35_vm0, %v2555_v2, 0.0 }
 0x511   :  { %1219 = vadd.xlane.f32.xlu2 %v1218_v3 }
 0x515   :  { %v1189_v9 = vpop.f32.mrf.mxu1 }
 0x516   :  { %v2562_v29 = vadd.f32 %v1906_v13, %v1189_v9 }
 0x518   :  { %v1221_v62 = vsel %vm35_vm0, %v2562_v29, 0.0 }
 0x519   :  { %1222 = vadd.xlane.f32.xlu1 %v1221_v62 }
 0x51d   :  { %v1192_v44 = vpop.f32.mrf.mxu1 }
 0x51e   :  { %v2569_v23 = vadd.f32 %v1907_v48, %v1192_v44 }
 0x520   :  { %v1224_v61 = vsel %vm35_vm0, %v2569_v23, 0.0 }
 0x521   :  { %1225 = vadd.xlane.f32.xlu1 %v1224_v61 }
 0x532   :  { %v1208_v51 = vpop.xlane.xlu0 %1207 }
 0x533   :  { %v1230_v54 = vmul.f32 %v1208_v51, %v1988_v20 }
 0x535   :  { %v2575_v15 = vsub.f32 %v2526_v18, %v1230_v54 }
 0x537   :  { %v1246_v22 = vmul.f32 %v2575_v15, %v2575_v15 }
 0x539   :  { %v1254_v5 = vsel %vm35_vm0, %v1246_v22, 0.0 }
 0x53a   :  { %v1211_v28 = vpop.xlane.xlu2 %1210  ;;  %1255 = vadd.xlane.f32.xlu2 %v1254_v5 }
 0x53b   :  { %v1231_v47 = vmul.f32 %v1211_v28, %v1988_v20 }
 0x53d   :  { %v2582_v0 = vsub.f32 %v2533_v35, %v1231_v47 }
 0x53f   :  { %v1247_v37 = vmul.f32 %v2582_v0, %v2582_v0 }
 0x541   :  { %v1257_v42 = vsel %vm35_vm0, %v1247_v37, 0.0  ;;  %v2633_v37 = vld [vmem:[#allocation2 + $0xf0] ss:$0 sm:$0xff] }
 0x542   :  { %1258 = vadd.xlane.f32.xlu0 %v1257_v42  ;;  %v1214_v27 = vpop.xlane.xlu2 %1213 }
 0x543   :  { %v1232_v34 = vmul.f32 %v1214_v27, %v1988_v20 }
 0x545   :  { %v2589_v46 = vsub.f32 %v2541_v59, %v1232_v34 }
 0x547   :  { %v1248_v55 = vmul.f32 %v2589_v46, %v2589_v46 }
 0x549   :  { %v1195_v7 = vpop.f32.mrf.mxu1  ;;  %v1260_v63 = vsel %vm35_vm0, %v1248_v55, 0.0 }
 0x54a   :  { %v2596_v52 = vadd.f32 %v1908_v1, %v1195_v7  ;;  %v1217_v50 = vpop.xlane.xlu2 %1216  ;;  %1261 = vadd.xlane.f32.xlu1 %v1260_v63  ;;  %v2639_v7 = vld [vmem:[#allocation2 + $0xf8] ss:$0 sm:$0xff] }
 0x54b   :  { %v1233_v43 = vmul.f32 %v1217_v50, %v1988_v20 }
 0x54c   :  { %v1227_v11 = vsel %vm35_vm0, %v2596_v52, 0.0 }
 0x54d   :  { %1228 = vadd.xlane.f32.xlu2 %v1227_v11  ;;  %v2603_v12 = vsub.f32 %v2548_v60, %v1233_v43 }
 0x54f   :  { %v1249_v39 = vmul.f32 %v2603_v12, %v2603_v12 }
 0x551   :  { %v1263_v8 = vsel %vm35_vm0, %v1249_v39, 0.0 }
 0x552   :  { %1264 = vadd.xlane.f32.xlu0 %v1263_v8 }
 0x584   :  { %v1220_v16 = vpop.xlane.xlu2 %1219 }
 0x585   :  { %v1234_v19 = vmul.f32 %v1220_v16, %v1988_v20 }
 0x587   :  { %v2610_v21 = vsub.f32 %v2555_v2, %v1234_v19 }
 0x589   :  { %v1250_v25 = vmul.f32 %v2610_v21, %v2610_v21 }
 0x58b   :  { %v1266_v30 = vsel %vm35_vm0, %v1250_v25, 0.0 }
 0x58c   :  { %v1223_v31 = vpop.xlane.xlu1 %1222  ;;  %1267 = vadd.xlane.f32.xlu2 %v1266_v30 }
 0x58d   :  { %v1235_v32 = vmul.f32 %v1223_v31, %v1988_v20 }
 0x58f   :  { %v2617_v33 = vsub.f32 %v2562_v29, %v1235_v32 }
 0x591   :  { %v1251_v53 = vmul.f32 %v2617_v33, %v2617_v33 }
 0x593   :  { %v1269_v41 = vsel %vm35_vm0, %v1251_v53, 0.0 }
 0x594   :  { %1270 = vadd.xlane.f32.xlu1 %v1269_v41  ;;  %v1226_v36 = vpop.xlane.xlu1 %1225 }
 0x595   :  { %v1236_v38 = vmul.f32 %v1226_v36, %v1988_v20 }
 0x597   :  { %v2624_v40 = vsub.f32 %v2569_v23, %v1236_v38 }
 0x599   :  { %v1252_v45 = vmul.f32 %v2624_v40, %v2624_v40 }
 0x59b   :  { %v1272_v26 = vsel %vm35_vm0, %v1252_v45, 0.0 }
 0x59c   :  { %1273 = vadd.xlane.f32.xlu0 %v1272_v26 }
 0x5ad   :  { %v1256_v58 = vpop.xlane.xlu2 %1255 }
 0x5ae   :  { %v1278_v10 = vmul.f32 %v1256_v58, %v1988_v20 }
 0x5b0   :  { %v1286_v17 = vadd.f32 1e-05, %v1278_v10 }
 0x5b2   :  { %1885 = vrsqrt.f32 %v1286_v17  ;;  %vm1300_vm14 = vweird.f32 %v1286_v17 }
 0x5b5   :  { %v1259_v4 = vpop.xlane.xlu0 %1258 }
 0x5b6   :  { %v1279_v6 = vmul.f32 %v1259_v4, %v1988_v20 }
 0x5b8   :  { %v1886_v24 = vpop.eup %1885  ;;  %v1287_v3 = vadd.f32 1e-05, %v1279_v6 }
 0x5b9   :  { %v1295_v9 = vmul.f32 %v1886_v24, %v1286_v17  ;;  %vm1301_vm13 = vweird.f32 %v1886_v24 }
 0x5ba   :  { %1887 = vrsqrt.f32 %v1287_v3  ;;  %vm1302_vm15 = vmor %vm1300_vm14, %vm1301_vm13  ;;  %vm1310_vm2 = vweird.f32 %v1287_v3 }
 0x5bb   :  { %v1296_v13 = vmul.f32 %v1886_v24, %v1295_v9 }
 0x5bd   :  { %v1297_v62 = vmul.f32 0.5, %v1296_v13  ;;  %v1262_v44 = vpop.xlane.xlu1 %1261 }
 0x5be   :  { %v1280_v61 = vmul.f32 %v1262_v44, %v1988_v20 }
 0x5bf   :  { %v1298_v48 = vsub.f32 1.5, %v1297_v62 }
 0x5c0   :  { %v1888_v51 = vpop.eup %1887  ;;  %v1229_v54 = vpop.xlane.xlu2 %1228  ;;  %v1288_v28 = vadd.f32 1e-05, %v1280_v61 }
 0x5c1   :  { %v1299_v22 = vmul.f32 %v1886_v24, %v1298_v48  ;;  %v1305_v5 = vmul.f32 %v1888_v51, %v1287_v3  ;;  %v1237_v47 = vmul.f32 %v1229_v54, %v1988_v20  ;;  %vm1311_vm1 = vweird.f32 %v1888_v51 }
 0x5c2   :  { %1889 = vrsqrt.f32 %v1288_v28  ;;  %vm1312_vm3 = vmor %vm1310_vm2, %vm1311_vm1  ;;  %vm1320_vm5 = vweird.f32 %v1288_v28 }
 0x5c3   :  { %v1303_v42 = vsel %vm1302_vm15, %v1886_v24, %v1299_v22  ;;  %v1306_v27 = vmul.f32 %v1888_v51, %v1305_v5  ;;  %v2637_v55 = vsub.f32 %v2596_v52, %v1237_v47 }
 0x5c4   :  { %v1374_v34 = vmul.f32 %v1303_v42, %v2575_v15 }
 0x5c5   :  { %v1307_v1 = vmul.f32 0.5, %v1306_v27  ;;  %v1265_v63 = vpop.xlane.xlu0 %1264  ;;  %v1253_v50 = vmul.f32 %v2637_v55, %v2637_v55 }
 0x5c6   :  { %v1384_v43 = vmul.f32 %v2633_v37, %v1374_v34  ;;  %v1281_v39 = vmul.f32 %v1265_v63, %v1988_v20 }
 0x5c7   :  { %v1308_v11 = vsub.f32 1.5, %v1307_v1  ;;  %v1275_v8 = vsel %vm35_vm0, %v1253_v50, 0.0 }
 0x5c8   :  { %v1394_v15 = vadd.f32 %v2639_v7, %v1384_v43  ;;  %v1890_v16 = vpop.eup %1889  ;;  %v1289_v25 = vadd.f32 1e-05, %v1281_v39  ;;  %1276 = vadd.xlane.f32.xlu2 %v1275_v8 }
 0x5c9   :  { %v1309_v19 = vmul.f32 %v1888_v51, %v1308_v11  ;;  %v1315_v30 = vmul.f32 %v1890_v16, %v1288_v28  ;;  %vm1321_vm4 = vweird.f32 %v1890_v16 }
 0x5ca   :  { %1717 = vmatmul.msk.f32.vlgmr.msrb.gmra.mxu2 %vm35_vm0, %v1394_v15  ;;  %1891 = vrsqrt.f32 %v1289_v25  ;;  %vm1322_vm6 = vmor %vm1320_vm5, %vm1321_vm4  ;;  %vm1330_vm8 = vweird.f32 %v1289_v25  ;;  %vm1491_vm5 = vcmask 523264  }
 0x5cb   :  { %v1313_v31 = vsel %vm1312_vm3, %v1888_v51, %v1309_v19  ;;  %v1316_v32 = vmul.f32 %v1890_v16, %v1315_v30 }
 0x5cc   :  { %v1375_v53 = vmul.f32 %v1313_v31, %v2582_v0 }
 0x5cd   :  { %v1317_v41 = vmul.f32 0.5, %v1316_v32 }
 0x5ce   :  { %v1385_v36 = vmul.f32 %v2633_v37, %v1375_v53 }
 0x5cf   :  { %v1318_v38 = vsub.f32 1.5, %v1317_v41 }
 0x5d0   :  { %v1395_v45 = vadd.f32 %v2639_v7, %v1385_v36  ;;  %v1892_v26 = vpop.eup %1891 }
 0x5d1   :  { %v1319_v49 = vmul.f32 %v1890_v16, %v1318_v38  ;;  %v1325_v14 = vmul.f32 %v1892_v26, %v1289_v25  ;;  %vm1331_vm7 = vweird.f32 %v1892_v26 }
 0x5d2   :  { %1718 = vmatmul.msk.f32.gmra.mxu2 %vm35_vm0, %v1395_v45  ;;  %vm1332_vm9 = vmor %vm1330_vm8, %vm1331_vm7 }
 0x5d3   :  { %v1323_v56 = vsel %vm1322_vm6, %v1890_v16, %v1319_v49  ;;  %v1326_v57 = vmul.f32 %v1892_v26, %v1325_v14 }
 0x5d4   :  { %v1376_v58 = vmul.f32 %v1323_v56, %v2589_v46  ;;  %v1487_v56 = vld [vmem:[#allocation2 + $0x90] sm:$0xff] }
 0x5d5   :  { %v1327_v10 = vmul.f32 0.5, %v1326_v57  ;;  %v1486_v57 = vld [vmem:[#allocation2 + $0x88] sm:$0xff] }
 0x5d6   :  { %v1386_v0 = vmul.f32 %v2633_v37, %v1376_v58 }
 0x5d7   :  { %v1328_v17 = vsub.f32 1.5, %v1327_v10  ;;  %v1485_v10 = vld [vmem:[#allocation2 + $0x80] sm:$0xff] }
 0x5d8   :  { %v1396_v4 = vadd.f32 %v2639_v7, %v1386_v0  ;;  %v1484_v0 = vld [vmem:[#allocation2 + $0x78] sm:$0xff] }
 0x5d9   :  { %v1329_v6 = vmul.f32 %v1892_v26, %v1328_v17  ;;  %v1483_v17 = vld [vmem:[#allocation2 + $0x70] sm:$0xff] }
 0x5da   :  { %1719 = vmatmul.msk.f32.gmra.mxu2 %vm35_vm0, %v1396_v4  ;;  %v1482_v4 = vld [vmem:[#allocation2 + $0x68] sm:$0xff] }
 0x5db   :  { %v1333_v24 = vsel %vm1332_vm9, %v1892_v26, %v1329_v6  ;;  %v1488_v26 = vld [vmem:[#allocation2 + $0x98] sm:$0xff]  ;;  %v1481_v6 = vld [vmem:[#allocation2 + $0x60] sm:$0xff] }
 0x5dc   :  { %v1377_v3 = vmul.f32 %v1333_v24, %v2603_v12  ;;  %1524 = vmatpush.msra.mxu3 %v1488_v26 }
 0x5de   :  { %v1387_v9 = vmul.f32 %v2633_v37, %v1377_v3  ;;  %1525 = vmatpush.msra.mxu3 %v1487_v56 }
 0x5e0   :  { %v1397_v13 = vadd.f32 %v2639_v7, %v1387_v9  ;;  %1526 = vmatpush.msra.mxu3 %v1486_v57 }
 0x5e2   :  { %1720 = vmatmul.msk.f32.gmra.mxu2 %vm35_vm0, %v1397_v13  ;;  %1527 = vmatpush.msra.mxu3 %v1485_v10 }
 0x5e4   :  { %1528 = vmatpush.msra.mxu3 %v1484_v0 }
 0x5e6   :  { %1529 = vmatpush.msra.mxu3 %v1483_v17 }
 0x5e8   :  { %1530 = vmatpush.msra.mxu3 %v1482_v4 }
 0x5ea   :  { %1531 = vmatpush.msra.mxu3 %v1481_v6 }
 0x5ff   :  { %v1268_v46 = vpop.xlane.xlu2 %1267 }
 0x600   :  { %v1282_v62 = vmul.f32 %v1268_v46, %v1988_v20 }
 0x602   :  { %v1290_v44 = vadd.f32 1e-05, %v1282_v62  ;;  %v2676_v62 = vld [vmem:[#allocation2 + $0x100] ss:$0 sm:$0xff] }
 0x604   :  { %1893 = vrsqrt.f32 %v1290_v44  ;;  %vm1340_vm11 = vweird.f32 %v1290_v44 }
 0x607   :  { %v1271_v48 = vpop.xlane.xlu1 %1270 }
 0x608   :  { %v1283_v61 = vmul.f32 %v1271_v48, %v1988_v20 }
 0x60a   :  { %v1894_v51 = vpop.eup %1893  ;;  %v1291_v54 = vadd.f32 1e-05, %v1283_v61 }
 0x60b   :  { %v1335_v22 = vmul.f32 %v1894_v51, %v1290_v44  ;;  %vm1341_vm10 = vweird.f32 %v1894_v51 }
 0x60c   :  { %1895 = vrsqrt.f32 %v1291_v54  ;;  %vm1342_vm12 = vmor %vm1340_vm11, %vm1341_vm10  ;;  %vm1350_vm14 = vweird.f32 %v1291_v54 }
 0x60d   :  { %v1336_v5 = vmul.f32 %v1894_v51, %v1335_v22 }
 0x60f   :  { %v1337_v12 = vmul.f32 0.5, %v1336_v5  ;;  %v1274_v28 = vpop.xlane.xlu0 %1273 }
 0x610   :  { %v1284_v47 = vmul.f32 %v1274_v28, %v1988_v20 }
 0x611   :  { %v1338_v42 = vsub.f32 1.5, %v1337_v12 }
 0x612   :  { %v1896_v27 = vpop.eup %1895  ;;  %v1292_v34 = vadd.f32 1e-05, %v1284_v47 }
 0x613   :  { %v1339_v1 = vmul.f32 %v1894_v51, %v1338_v42  ;;  %v1345_v63 = vmul.f32 %v1896_v27, %v1291_v54  ;;  %vm1351_vm13 = vweird.f32 %v1896_v27 }
 0x614   :  { %1897 = vrsqrt.f32 %v1292_v34  ;;  %vm1352_vm15 = vmor %vm1350_vm14, %vm1351_vm13  ;;  %vm1360_vm2 = vweird.f32 %v1292_v34 }
 0x615   :  { %v1343_v50 = vsel %vm1342_vm12, %v1894_v51, %v1339_v1  ;;  %v1346_v43 = vmul.f32 %v1896_v27, %v1345_v63 }
 0x616   :  { %v1378_v11 = vmul.f32 %v1343_v50, %v2610_v21 }
 0x617   :  { %v1347_v39 = vmul.f32 0.5, %v1346_v43 }
 0x618   :  { %v1388_v8 = vmul.f32 %v2633_v37, %v1378_v11  ;;  %v1571_v11 = vld [vmem:[#allocation2 + $0xd0] sm:$0xff] }
 0x619   :  { %v1348_v15 = vsub.f32 1.5, %v1347_v39  ;;  %v1569_v39 = vld [vmem:[#allocation2 + $0xc0] sm:$0xff] }
 0x61a   :  { %v1898_v16 = vpop.eup %1897  ;;  %v1398_v19 = vadd.f32 %v2639_v7, %v1388_v8  ;;  %v1568_v8 = vld [vmem:[#allocation2 + $0xb8] sm:$0xff] }
 0x61b   :  { %v1349_v25 = vmul.f32 %v1896_v27, %v1348_v15  ;;  %v1355_v30 = vmul.f32 %v1898_v16, %v1292_v34  ;;  %vm1361_vm1 = vweird.f32 %v1898_v16 }
 0x61c   :  { %1721 = vmatmul.msk.f32.gmra.mxu2 %vm35_vm0, %v1398_v19  ;;  %vm1362_vm3 = vmor %vm1360_vm2, %vm1361_vm1 }
 0x61d   :  { %v1353_v31 = vsel %vm1352_vm15, %v1896_v27, %v1349_v25  ;;  %v1356_v32 = vmul.f32 %v1898_v16, %v1355_v30 }
 0x61e   :  { %v1379_v53 = vmul.f32 %v1353_v31, %v2617_v33 }
 0x61f   :  { %v1357_v41 = vmul.f32 0.5, %v1356_v32 }
 0x620   :  { %v1389_v21 = vmul.f32 %v2633_v37, %v1379_v53 }
 0x621   :  { %v1358_v36 = vsub.f32 1.5, %v1357_v41 }
 0x622   :  { %v1399_v38 = vadd.f32 %v2639_v7, %v1389_v21  ;;  %v1567_v21 = vld [vmem:[#allocation2 + $0xb0] sm:$0xff] }
 0x623   :  { %v1359_v45 = vmul.f32 %v1898_v16, %v1358_v36  ;;  %v1566_v36 = vld [vmem:[#allocation2 + $0xa8] sm:$0xff] }
 0x624   :  { %1722 = vmatmul.msk.f32.gmra.mxu2 %vm35_vm0, %v1399_v38  ;;  %v1565_v38 = vld [vmem:[#allocation2 + $0xa0] sm:$0xff] }
 0x625   :  { %v1363_v49 = vsel %vm1362_vm3, %v1898_v16, %v1359_v45  ;;  %v1833_v45 = vld [vmem:[#allocation2 + $0x108] ss:$0 sm:$0xff] }
 0x626   :  { %v1380_v14 = vmul.f32 %v1363_v49, %v2624_v40 }
 0x628   :  { %v1390_v33 = vmul.f32 %v2633_v37, %v1380_v14 }
 0x62a   :  { %v1400_v58 = vadd.f32 %v2639_v7, %v1390_v33 }
 0x62c   :  { %1723 = vmatmul.msk.f32.gmra.mxu2 %vm35_vm0, %v1400_v58 }
 0x63b   :  { %v1277_v40 = vpop.xlane.xlu2 %1276 }
 0x63c   :  { %v1285_v24 = vmul.f32 %v1277_v40, %v1988_v20 }
 0x63e   :  { %v1293_v3 = vadd.f32 1e-05, %v1285_v24 }
 0x640   :  { %1899 = vrsqrt.f32 %v1293_v3  ;;  %vm1370_vm6 = vweird.f32 %v1293_v3 }
 0x646   :  { %v1900_v9 = vpop.eup %1899 }
 0x647   :  { %v1365_v13 = vmul.f32 %v1900_v9, %v1293_v3  ;;  %vm1371_vm4 = vweird.f32 %v1900_v9 }
 0x648   :  { %vm1372_vm7 = vmor %vm1370_vm6, %vm1371_vm4 }
 0x649   :  { %v1366_v46 = vmul.f32 %v1900_v9, %v1365_v13 }
 0x64b   :  { %v1367_v44 = vmul.f32 0.5, %v1366_v46 }
 0x64d   :  { %v1449_v48 = vpop.f32.mrf.mxu2  ;;  %v1368_v61 = vsub.f32 1.5, %v1367_v44 }
 0x64e   :  { %v1450_v51 = vadd.f32 %v2676_v62, %v1449_v48 }
 0x64f   :  { %v1369_v54 = vmul.f32 %v1900_v9, %v1368_v61 }
 0x650   :  { %v1473_v22 = vmax.f32 %v1450_v51, 0.0 }
 0x651   :  { %v1373_v5 = vsel %vm1372_vm7, %v1900_v9, %v1369_v54 }
 0x652   :  { %1725 = vmatmul.msk.f32.vlgmr.msra.gmra.mxu3 %vm1491_vm5, %v1473_v22  ;;  %v1381_v20 = vmul.f32 %v1373_v5, %v2637_v55  ;;  %v1834_v22 = vld [vmem:[#allocation2 + $0x110] ss:$0 sm:$0xff] }
 0x654   :  { %v1391_v28 = vmul.f32 %v2633_v37, %v1381_v20  ;;  %v1572_v37 = vld [vmem:[#allocation2 + $0xd8] sm:$0xff] }
 0x655   :  { %v1452_v12 = vpop.f32.mrf.mxu2  ;;  %1607 = vmatpush.msrb.mxu0 %v1572_v37 }
 0x656   :  { %v1453_v47 = vadd.f32 %v2676_v62, %v1452_v12  ;;  %v1401_v42 = vadd.f32 %v2639_v7, %v1391_v28  ;;  %v1570_v7 = vld [vmem:[#allocation2 + $0xc8] sm:$0xff] }
 0x657   :  { %1608 = vmatpush.msrb.mxu0 %v1571_v11 }
 0x658   :  { %v1474_v27 = vmax.f32 %v1453_v47, 0.0  ;;  %1724 = vmatmul.msk.f32.gmra.mxu2 %vm35_vm0, %v1401_v42 }
 0x659   :  { %1609 = vmatpush.msrb.mxu0 %v1570_v7 }
 0x65a   :  { %1726 = vmatmul.msk.f32.gmra.mxu3 %vm1491_vm5, %v1474_v27 }
 0x65b   :  { %1610 = vmatpush.msrb.mxu0 %v1569_v39 }
 0x65d   :  { %v1455_v34 = vpop.f32.mrf.mxu2  ;;  %1611 = vmatpush.msrb.mxu0 %v1568_v8 }
 0x65e   :  { %v1456_v1 = vadd.f32 %v2676_v62, %v1455_v34 }
 0x65f   :  { %1612 = vmatpush.msrb.mxu0 %v1567_v21 }
 0x660   :  { %v1475_v63 = vmax.f32 %v1456_v1, 0.0 }
 0x661   :  { %1613 = vmatpush.msrb.mxu0 %v1566_v36 }
 0x662   :  { %1727 = vmatmul.msk.f32.gmra.mxu3 %vm1491_vm5, %v1475_v63 }
 0x663   :  { %1614 = vmatpush.msrb.mxu0 %v1565_v38 }
 0x665   :  { %v1458_v50 = vpop.f32.mrf.mxu2 }
 0x666   :  { %v1459_v55 = vadd.f32 %v2676_v62, %v1458_v50 }
 0x668   :  { %v1476_v43 = vmax.f32 %v1459_v55, 0.0 }
 0x66a   :  { %1728 = vmatmul.msk.f32.gmra.mxu3 %vm1491_vm5, %v1476_v43 }
 0x69f   :  { %v1461_v15 = vpop.f32.mrf.mxu2 }
 0x6a0   :  { %v1462_v16 = vadd.f32 %v2676_v62, %v1461_v15 }
 0x6a2   :  { %v1477_v19 = vmax.f32 %v1462_v16, 0.0 }
 0x6a4   :  { %1729 = vmatmul.msk.f32.gmra.mxu3 %vm1491_vm5, %v1477_v19 }
 0x6a7   :  { %v1464_v25 = vpop.f32.mrf.mxu2 }
 0x6a8   :  { %v1465_v30 = vadd.f32 %v2676_v62, %v1464_v25 }
 0x6aa   :  { %v1478_v31 = vmax.f32 %v1465_v30, 0.0 }
 0x6ac   :  { %1730 = vmatmul.msk.f32.gmra.mxu3 %vm1491_vm5, %v1478_v31 }
 0x6af   :  { %v1467_v32 = vpop.f32.mrf.mxu2 }
 0x6b0   :  { %v1468_v53 = vadd.f32 %v2676_v62, %v1467_v32 }
 0x6b2   :  { %v1479_v41 = vmax.f32 %v1468_v53, 0.0 }
 0x6b4   :  { %1731 = vmatmul.msk.f32.gmra.mxu3 %vm1491_vm5, %v1479_v41 }
 0x6d5   :  { %v1533_v26 = vpop.f32.mrf.mxu3 }
 0x6d6   :  { %v1534_v49 = vadd.f32 %v1833_v45, %v1533_v26 }
 0x6d8   :  { %v1557_v14 = vmax.f32 %v1534_v49, 0.0 }
 0x6da   :  { %1733 = vmatmul.msk.f32.vlgmr.msrb.gmra.mxu0 %vm1491_vm5, %v1557_v14 }
 0x6db   :  { %v1470_v56 = vpop.f32.mrf.mxu2 }
 0x6dc   :  { %v1471_v33 = vadd.f32 %v2676_v62, %v1470_v56 }
 0x6dd   :  { %v1536_v57 = vpop.f32.mrf.mxu3 }
 0x6de   :  { %v1537_v58 = vadd.f32 %v1833_v45, %v1536_v57  ;;  %v1480_v10 = vmax.f32 %v1471_v33, 0.0 }
 0x6e0   :  { %v1558_v0 = vmax.f32 %v1537_v58, 0.0  ;;  %1732 = vmatmul.msk.f32.gmra.mxu3 %vm1491_vm5, %v1480_v10 }
 0x6e2   :  { %1734 = vmatmul.msk.f32.gmra.mxu0 %vm1491_vm5, %v1558_v0 }
 0x6e5   :  { %v1539_v17 = vpop.f32.mrf.mxu3 }
 0x6e6   :  { %v1540_v4 = vadd.f32 %v1833_v45, %v1539_v17 }
 0x6e8   :  { %v1559_v6 = vmax.f32 %v1540_v4, 0.0 }
 0x6ea   :  { %1735 = vmatmul.msk.f32.gmra.mxu0 %vm1491_vm5, %v1559_v6 }
 0x6ed   :  { %v1542_v40 = vpop.f32.mrf.mxu3 }
 0x6ee   :  { %v1543_v24 = vadd.f32 %v1833_v45, %v1542_v40 }
 0x6f0   :  { %v1560_v3 = vmax.f32 %v1543_v24, 0.0 }
 0x6f2   :  { %1736 = vmatmul.msk.f32.gmra.mxu0 %vm1491_vm5, %v1560_v3 }
 0x727   :  { %v1545_v9 = vpop.f32.mrf.mxu3 }
 0x728   :  { %v1546_v13 = vadd.f32 %v1833_v45, %v1545_v9 }
 0x72a   :  { %v1561_v46 = vmax.f32 %v1546_v13, 0.0 }
 0x72c   :  { %1737 = vmatmul.msk.f32.gmra.mxu0 %vm1491_vm5, %v1561_v46 }
 0x72f   :  { %v1548_v62 = vpop.f32.mrf.mxu3 }
 0x730   :  { %v1549_v44 = vadd.f32 %v1833_v45, %v1548_v62 }
 0x732   :  { %v1562_v48 = vmax.f32 %v1549_v44, 0.0 }
 0x734   :  { %1738 = vmatmul.msk.f32.gmra.mxu0 %vm1491_vm5, %v1562_v48 }
 0x737   :  { %v1551_v61 = vpop.f32.mrf.mxu3 }
 0x738   :  { %v1552_v51 = vadd.f32 %v1833_v45, %v1551_v61 }
 0x73a   :  { %v1563_v54 = vmax.f32 %v1552_v51, 0.0 }
 0x73c   :  { %1739 = vmatmul.msk.f32.gmra.mxu0 %vm1491_vm5, %v1563_v54 }
 0x757   :  { %v1616_v5 = vpop.f32.mrf.mxu0 }
 0x758   :  { %v1617_v20 = vadd.f32 %v1834_v22, %v1616_v5 }
 0x75a   :  { %v1640_v12 = vadd.f32 %v1617_v20, %v2526_v18 }
 0x75c   :  { %1648 = vst.msk [vmem:[%s2748_s2] sm:$0xff] %vm35_vm0, %v1640_v12 }
 0x75f   :  { %v1619_v28 = vpop.f32.mrf.mxu0 }
 0x760   :  { %v1620_v47 = vadd.f32 %v1834_v22, %v1619_v28 }
 0x762   :  { %v1641_v42 = vadd.f32 %v1620_v47, %v2533_v35 }
 0x763   :  { %v1554_v27 = vpop.f32.mrf.mxu3 }
 0x764   :  { %1649 = vst.msk [vmem:[%s2748_s2 + $0x8] sm:$0xff] %vm35_vm0, %v1641_v42  ;;  %v1555_v34 = vadd.f32 %v1833_v45, %v1554_v27 }
 0x766   :  { %v1564_v1 = vmax.f32 %v1555_v34, 0.0 }
 0x767   :  { %v1622_v63 = vpop.f32.mrf.mxu0 }
 0x768   :  { %v1623_v50 = vadd.f32 %v1834_v22, %v1622_v63  ;;  %1740 = vmatmul.msk.f32.gmra.mxu0 %vm1491_vm5, %v1564_v1 }
 0x76a   :  { %v1642_v18 = vadd.f32 %v1623_v50, %v2541_v59 }
 0x76c   :  { %1650 = vst.msk [vmem:[%s2748_s2 + $0x10] sm:$0xff] %vm35_vm0, %v1642_v18 }
 0x76f   :  { %v1625_v35 = vpop.f32.mrf.mxu0 }
 0x770   :  { %v1626_v55 = vadd.f32 %v1834_v22, %v1625_v35 }
 0x772   :  { %v1643_v43 = vadd.f32 %v1626_v55, %v2548_v60 }
 0x774   :  { %1651 = vst.msk [vmem:[%s2748_s2 + $0x18] sm:$0xff] %vm35_vm0, %v1643_v43 }
 0x7a9   :  { %v1628_v37 = vpop.f32.mrf.mxu0 }
 0x7aa   :  { %v1629_v11 = vadd.f32 %v1834_v22, %v1628_v37 }
 0x7ac   :  { %v1644_v7 = vadd.f32 %v1629_v11, %v2555_v2 }
 0x7ae   :  { %1652 = vst.msk [vmem:[%s2748_s2 + $0x20] sm:$0xff] %vm35_vm0, %v1644_v7 }
 0x7b1   :  { %v1631_v59 = vpop.f32.mrf.mxu0 }
 0x7b2   :  { %v1632_v39 = vadd.f32 %v1834_v22, %v1631_v59 }
 0x7b4   :  { %v1645_v8 = vadd.f32 %v1632_v39, %v2562_v29 }
 0x7b6   :  { %1653 = vst.msk [vmem:[%s2748_s2 + $0x28] sm:$0xff] %vm35_vm0, %v1645_v8 }
 0x7b9   :  { %v1634_v60 = vpop.f32.mrf.mxu0 }
 0x7ba   :  { %v1635_v15 = vadd.f32 %v1834_v22, %v1634_v60 }
 0x7bc   :  { %v1646_v16 = vadd.f32 %v1635_v15, %v2569_v23 }
 0x7be   :  { %1654 = vst.msk [vmem:[%s2748_s2 + $0x30] sm:$0xff] %vm35_vm0, %v1646_v16 }
 0x7e5   :  { %v1637_v2 = vpop.f32.mrf.mxu0 }
 0x7e6   :  { %v1638_v19 = vadd.f32 %v1834_v22, %v1637_v2 }
 0x7e8   :  { %v1647_v25 = vadd.f32 %v1638_v19, %v2596_v52 }
 0x7ea   :  { %1655 = vst.msk [vmem:[%s2748_s2 + $0x38] sm:$0xff] %vm35_vm0, %v1647_v25 }
 0x7eb   :  { %1660 = vsyncpa [#allocation3], 1 }

</bundles_post_ra>
